<compile_context>
chip_gen: v5e
topology: v5e:2x2
jax: 0.10.0
libtpu: 0.0.40
codegen_flags: <defaults>
</compile_context>

<pallas_src>
import functools
import math

import numpy as np
import jax
import jax.numpy as jnp
from jax import lax
from jax.experimental import pallas as pl
from jax.experimental.pallas import tpu as pltpu

LN_EPS = 1e-5
INV_SQRT2 = 0.7071067811865476

# Set to jnp.bfloat16 on v6e/v7x for higher MXU throughput on the 1x1-conv matmuls
# (accumulation stays f32 via preferred_element_type).  Kept f32 here so the 2e-3
# check against the f32 reference holds on every generation.
MATMUL_DTYPE = jnp.float32


def _parallel(n=1):
    return pltpu.CompilerParams(dimension_semantics=("parallel",) * n)


def _pick_tile(m, target=1024):
    """Largest row tile <= target that divides m (multiple of 8 when tiling)."""
    if m <= target:
        return m
    for t in range(target, 7, -1):
        if m % t == 0 and t % 8 == 0:
            return t
    return m


# ----------------------------------------------------------------------------- kernels
def ln_matmul_kernel(x_ref, g_ref, b_ref, w_ref, o_ref):
    # LayerNorm over channels fused with the following 1x1 conv (token matmul).
    x = x_ref[...].astype(jnp.float32)
    mean = jnp.mean(x, axis=-1, keepdims=True)
    xc = x - mean
    var = jnp.mean(xc * xc, axis=-1, keepdims=True)
    y = xc * lax.rsqrt(var + LN_EPS) * g_ref[...] + b_ref[...]
    o_ref[...] = jnp.dot(y.astype(MATMUL_DTYPE), w_ref[...].astype(MATMUL_DTYPE),
                         preferred_element_type=jnp.float32).astype(o_ref.dtype)


def matmul_residual_kernel(x_ref, w_ref, r_ref, o_ref):
    # 1x1 conv (token matmul) fused with the residual add.
    o_ref[...] = (jnp.dot(x_ref[...].astype(MATMUL_DTYPE), w_ref[...].astype(MATMUL_DTYPE),
                          preferred_element_type=jnp.float32)
                  + r_ref[...].astype(jnp.float32)).astype(o_ref.dtype)


def gdfn_out_kernel(x12_ref, w_ref, r_ref, o_ref):
    # gelu(x1) * x2 gate fused with the project_out matmul and the residual add.
    x12 = x12_ref[...].astype(jnp.float32)
    hidden = x12.shape[1] // 2
    x1 = x12[:, :hidden]
    x2 = x12[:, hidden:]
    g = 0.5 * x1 * (1.0 + lax.erf(x1 * INV_SQRT2)) * x2            # exact GELU gate
    o_ref[...] = (jnp.dot(g.astype(MATMUL_DTYPE), w_ref[...].astype(MATMUL_DTYPE),
                          preferred_element_type=jnp.float32)
                  + r_ref[...].astype(jnp.float32)).astype(o_ref.dtype)


def dwconv3x3_kernel(x_ref, w_ref, o_ref):
    # depthwise 3x3, padding=1, NHWC; x: (1, H+2, W+2, C) zero-padded, w: (3, 3, C)
    H, W = o_ref.shape[1], o_ref.shape[2]
    x = x_ref[...].astype(jnp.float32)
    w = w_ref[...].astype(jnp.float32)
    acc = jnp.zeros(o_ref.shape, jnp.float32)
    for dy in range(3):
        for dx in range(3):
            acc = acc + x[:, dy:dy + H, dx:dx + W, :] * w[dy, dx, :]
    o_ref[...] = acc.astype(o_ref.dtype)


def mdta_core_kernel(num_heads, x_ref, c2_ref, s2_ref, t_ref, o_ref):
    # One batch item per grid step.
    #   x_ref : (1, L, 3C) channels-last tokens straight from the depthwise conv
    #   c2/s2 : (L, L) dense 2-D DFT cos/sin matrices (symmetric)
    #   t_ref : (1, num_heads) temperature, in SMEM
    #   o_ref : (1, L, C) attention output, channels-last tokens
    L = x_ref.shape[1]
    C3 = x_ref.shape[2]
    C = C3 // 3
    d = C // num_heads

    xt = x_ref[0].astype(jnp.float32)                 # (L, 3C)
    qk = xt[:, 0:2 * C]                               # (L, 2C)  q and k channels
    v = xt[:, 2 * C:]                                 # (L, C)

    # inv_mag(x) = real(ifft2(exp(1j * angle(fft2(x))))) per channel plane, evaluated
    # as dense 2-D DFT matmuls over all q/k channels at once (big MXU matmuls).
    # TODO(synk): switch to a separable row/column DFT for large H*W (O(L*(H+W))).
    c2 = c2_ref[...]
    s2 = s2_ref[...]
    xr = jnp.dot(c2, qk, preferred_element_type=jnp.float32)
    xi = -jnp.dot(s2, qk, preferred_element_type=jnp.float32)
    mag = jnp.sqrt(xr * xr + xi * xi)
    nz = mag > 0.0
    safe = jnp.where(nz, mag, 1.0)
    ur = jnp.where(nz, xr / safe, 1.0)                # angle(0) == 0 -> 1 + 0j
    ui = jnp.where(nz, xi / safe, 0.0)
    qk_pha = (jnp.dot(c2, ur, preferred_element_type=jnp.float32)
              - jnp.dot(s2, ui, preferred_element_type=jnp.float32)) * (1.0 / L)

    qk_t = jnp.transpose(qk_pha)                      # (2C, L): channel-major q/k

    for h in range(num_heads):
        qh = qk_t[h * d:(h + 1) * d, :]               # (d, L)
        kh = qk_t[C + h * d:C + (h + 1) * d, :]       # (d, L)
        vh = v[:, h * d:(h + 1) * d]                  # (L, d)

        qn = qh * lax.rsqrt(jnp.maximum(jnp.sum(qh * qh, axis=-1, keepdims=True), 1e-24))
        kn = kh * lax.rsqrt(jnp.maximum(jnp.sum(kh * kh, axis=-1, keepdims=True), 1e-24))

        logits = lax.dot_general(qn, kn, (((1,), (1,)), ((), ())),
                                 preferred_element_type=jnp.float32) * t_ref[0, h]
        logits = logits - jnp.max(logits, axis=-1, keepdims=True)
        p = jnp.exp(logits)
        # approx=True is a further EUP-side win once tolerance allows it.
        attn = p * pl.reciprocal(jnp.sum(p, axis=-1, keepdims=True), approx=False)

        # out[l, i] = sum_j attn[i, j] * v[j, l]  ->  (L, d) channels-last directly
        out_h = lax.dot_general(vh, attn, (((1,), (1,)), ((), ())),
                                preferred_element_type=jnp.float32)
        o_ref[0, :, h * d:(h + 1) * d] = out_h.astype(o_ref.dtype)


# ----------------------------------------------------------------------------- wrappers
def ln_matmul(x_tok, gamma, beta, w, target_tile=1024):
    # LayerNorm(channels) followed by a 1x1 conv; w is torch-style (Cout, Cin).
    M, Cin = x_tok.shape
    Cout = w.shape[0]
    tm = _pick_tile(M, target_tile)
    wt = jnp.transpose(w)
    return pl.pallas_call(
        ln_matmul_kernel,
        out_shape=jax.ShapeDtypeStruct((M, Cout), x_tok.dtype),
        grid=(M // tm,),
        in_specs=[pl.BlockSpec((tm, Cin), lambda i: (i, 0)),
                  pl.BlockSpec((1, Cin), lambda i: (0, 0)),
                  pl.BlockSpec((1, Cin), lambda i: (0, 0)),
                  pl.BlockSpec((Cin, Cout), lambda i: (0, 0))],
        out_specs=pl.BlockSpec((tm, Cout), lambda i: (i, 0)),
        compiler_params=_parallel(1),
    )(x_tok, gamma.reshape(1, Cin), beta.reshape(1, Cin), wt)


def project_residual(x_tok, w, residual, target_tile=1024):
    # 1x1 conv + residual add; w is torch-style (Cout, Cin).
    M, Cin = x_tok.shape
    Cout = w.shape[0]
    tm = _pick_tile(M, target_tile)
    wt = jnp.transpose(w)
    return pl.pallas_call(
        matmul_residual_kernel,
        out_shape=jax.ShapeDtypeStruct((M, Cout), x_tok.dtype),
        grid=(M // tm,),
        in_specs=[pl.BlockSpec((tm, Cin), lambda i: (i, 0)),
                  pl.BlockSpec((Cin, Cout), lambda i: (0, 0)),
                  pl.BlockSpec((tm, Cout), lambda i: (i, 0))],
        out_specs=pl.BlockSpec((tm, Cout), lambda i: (i, 0)),
        compiler_params=_parallel(1),
    )(x_tok, wt, residual)


def gdfn_output(x12_tok, w, residual, target_tile=1024):
    # gelu(x1)*x2 gate fused with project_out (torch-style (Cout, hidden)) + residual.
    M, H2 = x12_tok.shape
    Cout = w.shape[0]
    tm = _pick_tile(M, target_tile)
    wt = jnp.transpose(w)
    return pl.pallas_call(
        gdfn_out_kernel,
        out_shape=jax.ShapeDtypeStruct((M, Cout), x12_tok.dtype),
        grid=(M // tm,),
        in_specs=[pl.BlockSpec((tm, H2), lambda i: (i, 0)),
                  pl.BlockSpec((H2 // 2, Cout), lambda i: (0, 0)),
                  pl.BlockSpec((tm, Cout), lambda i: (i, 0))],
        out_specs=pl.BlockSpec((tm, Cout), lambda i: (i, 0)),
        compiler_params=_parallel(1),
    )(x12_tok, wt, residual)


def depthwise_conv3x3(x_nhwc, w_dw):
    # x: (B, H, W, C); w_dw: (3, 3, C)  (cross-correlation, padding=1, no bias)
    # TODO(synk): row-tile with a 2-row halo for large H/W so the block stays well
    #             under v7x's smaller VMEM; whole-image blocks are optimal at these sizes.
    B, H, W, C = x_nhwc.shape
    xp = jnp.pad(x_nhwc, ((0, 0), (1, 1), (1, 1), (0, 0)))
    return pl.pallas_call(
        dwconv3x3_kernel,
        out_shape=jax.ShapeDtypeStruct((B, H, W, C), x_nhwc.dtype),
        grid=(B,),
        in_specs=[pl.BlockSpec((1, H + 2, W + 2, C), lambda b: (b, 0, 0, 0)),
                  pl.BlockSpec((3, 3, C), lambda b: (0, 0, 0))],
        out_specs=pl.BlockSpec((1, H, W, C), lambda b: (b, 0, 0, 0)),
        compiler_params=_parallel(1),
    )(xp, w_dw)


def _dft2_matrices(H, W):
    # Dense symmetric 2-D DFT cos/sin matrices over flattened tokens l = h*W + w.
    L = H * W
    ll = np.arange(L)
    u = (ll // W).astype(np.float64)
    v = (ll % W).astype(np.float64)
    ang = 2.0 * np.pi * (np.outer(u, u) / H + np.outer(v, v) / W)
    return (jnp.asarray(np.cos(ang), jnp.float32),
            jnp.asarray(np.sin(ang), jnp.float32))


def mdta_core(x_btc, temperature, num_heads, c2, s2):
    # x_btc: (B, L, 3C) channels-last tokens (depthwise-conv output); out: (B, L, C)
    B, L, C3 = x_btc.shape
    C = C3 // 3
    kern = functools.partial(mdta_core_kernel, num_heads)
    return pl.pallas_call(
        kern,
        out_shape=jax.ShapeDtypeStruct((B, L, C), x_btc.dtype),
        grid=(B,),
        in_specs=[pl.BlockSpec((1, L, C3), lambda b: (b, 0, 0)),
                  pl.BlockSpec((L, L), lambda b: (0, 0)),
                  pl.BlockSpec((L, L), lambda b: (0, 0)),
                  pl.BlockSpec(memory_space=pltpu.MemorySpace.SMEM)],
        out_specs=pl.BlockSpec((1, L, C), lambda b: (b, 0, 0)),
        compiler_params=_parallel(1),
    )(x_btc, c2, s2, temperature)


# ----------------------------------------------------------------------------- forward
def transformer_block_forward(x_nchw, params):
    B, C, H, W = x_nchw.shape
    nh = params["num_heads"]
    L = H * W
    M = B * L
    c2, s2 = _dft2_matrices(H, W)

    # NCHW -> channels-last tokens (b, h*W + w, c); same ordering as torch reshape+transpose
    x_tok = jnp.transpose(x_nchw, (0, 2, 3, 1)).reshape(M, C)

    # ---------------- MDTA branch ----------------
    qkv = ln_matmul(x_tok, params["ln1_g"], params["ln1_b"], params["qkv_w"])      # (M, 3C)
    qkv_dw = depthwise_conv3x3(qkv.reshape(B, H, W, 3 * C), params["qkv_dw_w"])    # NHWC
    attn = mdta_core(qkv_dw.reshape(B, L, 3 * C), params["temperature"], nh, c2, s2)
    x_tok = project_residual(attn.reshape(M, C), params["attn_po_w"], x_tok)       # fused +res

    # ---------------- GDFN branch ----------------
    hidden = params["ffn_po_w"].shape[1]
    pi = ln_matmul(x_tok, params["ln2_g"], params["ln2_b"], params["ffn_pi_w"])    # (M, 2h)
    pi_dw = depthwise_conv3x3(pi.reshape(B, H, W, 2 * hidden), params["ffn_dw_w"])
    x_tok = gdfn_output(pi_dw.reshape(M, 2 * hidden), params["ffn_po_w"], x_tok)   # fused +res

    return jnp.transpose(x_tok.reshape(B, H, W, C), (0, 3, 1, 2))                  # back to NCHW


# ----------------------------------------------------------------------------- params
def init_params(key, channels, num_heads, expansion_factor):
    hidden = int(channels * expansion_factor)
    ks = jax.random.split(key, 6)

    def w(k, shape, fan_in):
        return (jax.random.normal(k, shape, jnp.float32) / math.sqrt(fan_in)).astype(jnp.float32)

    return dict(
        num_heads=num_heads,
        ln1_g=jnp.ones((channels,), jnp.float32),
        ln1_b=jnp.zeros((channels,), jnp.float32),
        ln2_g=jnp.ones((channels,), jnp.float32),
        ln2_b=jnp.zeros((channels,), jnp.float32),
        temperature=jnp.ones((1, num_heads), jnp.float32),       # torch: (1, nh, 1, 1) of ones
        qkv_w=w(ks[0], (3 * channels, channels), channels),      # Conv2d(c, 3c, 1)
        qkv_dw_w=w(ks[1], (3, 3, 3 * channels), 9),              # depthwise 3x3, (3,3,ch) layout
        attn_po_w=w(ks[2], (channels, channels), channels),      # Conv2d(c, c, 1)
        ffn_pi_w=w(ks[3], (2 * hidden, channels), channels),     # Conv2d(c, 2h, 1)
        ffn_dw_w=w(ks[4], (3, 3, 2 * hidden), 9),                # depthwise 3x3
        ffn_po_w=w(ks[5], (channels, hidden), hidden),           # Conv2d(h, c, 1)
    )


# ----------------------------------------------------------------------------- pure-JAX reference
def _ref_forward(x, params):
    B, C, H, W = x.shape
    nh = params["num_heads"]
    d = C // nh

    def ln(z, g, b):
        t = jnp.transpose(z.reshape(B, C, H * W), (0, 2, 1))
        mean = t.mean(-1, keepdims=True)
        var = ((t - mean) ** 2).mean(-1, keepdims=True)
        t = (t - mean) / jnp.sqrt(var + LN_EPS) * g + b
        return jnp.transpose(t, (0, 2, 1)).reshape(B, C, H, W)

    def pw(z, w):
        return jnp.einsum("oc,bchw->bohw", w, z)

    def dw(z, wdw):
        zp = jnp.pad(z, ((0, 0), (0, 0), (1, 1), (1, 1)))
        out = jnp.zeros_like(z)
        for dy in range(3):
            for dx in range(3):
                out = out + zp[:, :, dy:dy + H, dx:dx + W] * wdw[dy, dx, :][None, :, None, None]
        return out

    def im(z):
        f = jnp.fft.fft2(z)
        return jnp.real(jnp.fft.ifft2(jnp.exp(1j * jnp.angle(f))))

    y = ln(x, params["ln1_g"], params["ln1_b"])
    qkv = dw(pw(y, params["qkv_w"]), params["qkv_dw_w"])
    q, k, v = qkv[:, :C], qkv[:, C:2 * C], qkv[:, 2 * C:]
    q, k = im(q), im(k)
    q = q.reshape(B, nh, d, H * W)
    k = k.reshape(B, nh, d, H * W)
    v = v.reshape(B, nh, d, H * W)
    q = q / jnp.maximum(jnp.linalg.norm(q, axis=-1, keepdims=True), 1e-12)
    k = k / jnp.maximum(jnp.linalg.norm(k, axis=-1, keepdims=True), 1e-12)
    attn = jax.nn.softmax(jnp.einsum("bhdl,bhel->bhde", q, k)
                          * params["temperature"].reshape(1, nh, 1, 1), axis=-1)
    out = jnp.einsum("bhde,bhel->bhdl", attn, v).reshape(B, C, H, W)
    x = x + pw(out, params["attn_po_w"])

    y = ln(x, params["ln2_g"], params["ln2_b"])
    hidden = params["ffn_po_w"].shape[1]
    t = dw(pw(y, params["ffn_pi_w"]), params["ffn_dw_w"])
    x1, x2 = t[:, :hidden], t[:, hidden:]
    x = x + pw(jax.nn.gelu(x1, approximate=False) * x2, params["ffn_po_w"])
    return x


# ----------------------------------------------------------------------------- main
if __name__ == "__main__":
    B, C, H, W = 2, 8, 16, 16
    num_heads, expansion = 2, 2

    key = jax.random.PRNGKey(0)
    kx, kp = jax.random.split(key)
    x = jax.random.normal(kx, (B, C, H, W), jnp.float32)
    params = init_params(kp, C, num_heads, expansion)

    out = transformer_block_forward(x, params)
    out = jax.block_until_ready(out)
    assert out.shape == (B, C, H, W)
    assert out.dtype == jnp.float32

    ref = jax.block_until_ready(_ref_forward(x, params))
    np.testing.assert_allclose(np.asarray(out), np.asarray(ref), rtol=2e-3, atol=2e-3)

    print("KERNEL_OK")
</pallas_src>

<mosaic_0001>
module attributes {stable_mosaic.version = 11 : i64} {
  func.func @ln_matmul_kernel(%arg0: i32, %arg1: memref<512x8xf32, #tpu.memory_space<vmem>>, %arg2: memref<1x8xf32, #tpu.memory_space<vmem>>, %arg3: memref<1x8xf32, #tpu.memory_space<vmem>>, %arg4: memref<8x24xf32, #tpu.memory_space<vmem>>, %arg5: memref<512x24xf32, #tpu.memory_space<vmem>>) attributes {dimension_semantics = [#tpu.dimension_semantics<parallel>], iteration_bounds = array<i64: 1>, scalar_prefetch = 0 : i64, scratch_operands = 0 : i64, tpu.core_type = #tpu.core_type<tc>, window_params = [{transform_indices = @transform_0, window_bounds = array<i64: 512, 8>}, {pipeline_mode = #tpu.pipeline_mode<synchronous>, transform_indices = @transform_1, window_bounds = array<i64: 1, 8>}, {pipeline_mode = #tpu.pipeline_mode<synchronous>, transform_indices = @transform_2, window_bounds = array<i64: 1, 8>}, {pipeline_mode = #tpu.pipeline_mode<synchronous>, transform_indices = @transform_3, window_bounds = array<i64: 8, 24>}, {transform_indices = @transform_4, window_bounds = array<i64: 512, 24>}]} {
    %c0 = arith.constant 0 : index
    %c0_0 = arith.constant 0 : index
    %0 = vector.load %arg1[%c0, %c0_0] : memref<512x8xf32, #tpu.memory_space<vmem>>, vector<512x8xf32>
    %cst = arith.constant dense<0.000000e+00> : vector<512xf32>
    %1 = vector.multi_reduction <add>, %0, %cst [1] : vector<512x8xf32> to vector<512xf32>
    %2 = vector.shape_cast %1 : vector<512xf32> to vector<512x1xf32>
    %cst_1 = arith.constant 8.000000e+00 : f32
    %3 = vector.broadcast %cst_1 : f32 to vector<512x1xf32>
    %4 = arith.divf %2, %3 : vector<512x1xf32>
    %5 = vector.broadcast %4 : vector<512x1xf32> to vector<512x8xf32>
    %6 = arith.subf %0, %5 : vector<512x8xf32>
    %7 = arith.mulf %6, %6 : vector<512x8xf32>
    %cst_2 = arith.constant dense<0.000000e+00> : vector<512xf32>
    %8 = vector.multi_reduction <add>, %7, %cst_2 [1] : vector<512x8xf32> to vector<512xf32>
    %9 = vector.shape_cast %8 : vector<512xf32> to vector<512x1xf32>
    %cst_3 = arith.constant 8.000000e+00 : f32
    %10 = vector.broadcast %cst_3 : f32 to vector<512x1xf32>
    %11 = arith.divf %9, %10 : vector<512x1xf32>
    %cst_4 = arith.constant 9.99999974E-6 : f32
    %12 = vector.broadcast %cst_4 : f32 to vector<512x1xf32>
    %13 = arith.addf %11, %12 : vector<512x1xf32>
    %14 = math.rsqrt %13 : vector<512x1xf32>
    %15 = vector.broadcast %14 : vector<512x1xf32> to vector<512x8xf32>
    %16 = arith.mulf %6, %15 : vector<512x8xf32>
    %c0_5 = arith.constant 0 : index
    %c0_6 = arith.constant 0 : index
    %17 = vector.load %arg2[%c0_5, %c0_6] : memref<1x8xf32, #tpu.memory_space<vmem>>, vector<1x8xf32>
    %18 = vector.broadcast %17 : vector<1x8xf32> to vector<512x8xf32>
    %19 = arith.mulf %16, %18 : vector<512x8xf32>
    %c0_7 = arith.constant 0 : index
    %c0_8 = arith.constant 0 : index
    %20 = vector.load %arg3[%c0_7, %c0_8] : memref<1x8xf32, #tpu.memory_space<vmem>>, vector<1x8xf32>
    %21 = vector.broadcast %20 : vector<1x8xf32> to vector<512x8xf32>
    %22 = arith.addf %19, %21 : vector<512x8xf32>
    %c0_9 = arith.constant 0 : index
    %c0_10 = arith.constant 0 : index
    %23 = vector.load %arg4[%c0_9, %c0_10] : memref<8x24xf32, #tpu.memory_space<vmem>>, vector<8x24xf32>
    %cst_11 = arith.constant dense<0.000000e+00> : vector<512x24xf32>
    %24 = tpu.matmul %22, %23, %cst_11 {dimension_numbers = #tpu.dot_dimension_numbers<[1], [0], [0], [1], [0, 0, 1, 1], [], []>} : vector<512x8xf32>, vector<8x24xf32>, vector<512x24xf32> -> vector<512x24xf32>
    %c0_12 = arith.constant 0 : index
    %c0_13 = arith.constant 0 : index
    %25 = vector.load %arg5[%c0_12, %c0_13] : memref<512x24xf32, #tpu.memory_space<vmem>>, vector<512x24xf32>
    tpu.vector_store %arg5[%c0_12, %c0_13], %24 {strides = array<i32>} : memref<512x24xf32, #tpu.memory_space<vmem>>, vector<512x24xf32>,
    return
  }
  func.func @transform_0(%arg0: i32) -> (i32, i32) {
    %c0_i32 = arith.constant 0 : i32
    %c0_i32_0 = arith.constant 0 : i32
    return %arg0, %c0_i32 : i32, i32
  }
  func.func @transform_1(%arg0: i32) -> (i32, i32) {
    %c0_i32 = arith.constant 0 : i32
    %c0_i32_0 = arith.constant 0 : i32
    %c0_i32_1 = arith.constant 0 : i32
    return %c0_i32, %c0_i32_0 : i32, i32
  }
  func.func @transform_2(%arg0: i32) -> (i32, i32) {
    %c0_i32 = arith.constant 0 : i32
    %c0_i32_0 = arith.constant 0 : i32
    %c0_i32_1 = arith.constant 0 : i32
    return %c0_i32, %c0_i32_0 : i32, i32
  }
  func.func @transform_3(%arg0: i32) -> (i32, i32) {
    %c0_i32 = arith.constant 0 : i32
    %c0_i32_0 = arith.constant 0 : i32
    %c0_i32_1 = arith.constant 0 : i32
    return %c0_i32, %c0_i32_0 : i32, i32
  }
  func.func @transform_4(%arg0: i32) -> (i32, i32) {
    %c0_i32 = arith.constant 0 : i32
    %c0_i32_0 = arith.constant 0 : i32
    return %arg0, %c0_i32 : i32, i32
  }
}

</mosaic_0001>

<bundles_post_ra>
// kernel: tpu_custom_call.1
= control target key start
LH: loop header
LB: loop body
LE: loop exit
PB: predicated region body
PF: predicated region fallthrough
CT: control target
= control target key end

     0   :  { %vm81_vm0 = vcmask 64512   ;;  %s4771_s0 = inlined_call_operand.vmem [shape: f32[512,8], index: 0, kind: input, shape index: {}]   ;;  %s4772_s1 = inlined_call_operand.vmem [shape: f32[1,8], index: 1, kind: input, shape index: {}]   ;;  %s4773_s2 = inlined_call_operand.vmem [shape: f32[1,8], index: 2, kind: input, shape index: {}]   ;;  %s4774_s3 = inlined_call_operand.vmem [shape: f32[8,24], index: 3, kind: input, shape index: {}]   ;;  %s4775_s4 = inlined_call_operand.vmem [shape: f32[512,24], index: 4, kind: output, shape index: {}]  }
   0x1   :  { %v2358_v0 = vld [vmem:[%s4771_s0 + $0x20] sm:$0xff]  ;;  %v2363_v1 = vld [vmem:[%s4771_s0 + $0x10] sm:$0xff]  ;;  %v2379_v6 = vld [vmem:[%s4771_s0 + $0x28] sm:$0xff] }
   0x2   :  { %v2368_v2 = vld [vmem:[%s4771_s0] sm:$0xff]  ;;  %v94_v3 = vsel %vm81_vm0, %v2358_v0, 0.0  ;;  %v88_v4 = vsel %vm81_vm0, %v2363_v1, 0.0  ;;  %v2384_v7 = vld [vmem:[%s4771_s0 + $0x18] sm:$0xff]  ;;  %v2389_v8 = vld [vmem:[%s4771_s0 + $0x8] sm:$0xff]  ;;  %v97_v9 = vsel %vm81_vm0, %v2379_v6, 0.0 }
   0x3   :  { %v82_v5 = vsel %vm81_vm0, %v2368_v2, 0.0  ;;  %95 = vadd.xlane.f32.xlu2 %v94_v3  ;;  %89 = vadd.xlane.f32.xlu1 %v88_v4  ;;  %v91_v10 = vsel %vm81_vm0, %v2384_v7, 0.0  ;;  %v85_v11 = vsel %vm81_vm0, %v2389_v8, 0.0  ;;  %v2400_v12 = vld [vmem:[%s4771_s0 + $0x80] sm:$0xff]  ;;  %v2421_v18 = vld [vmem:[%s4771_s0 + $0x188] sm:$0xff]  ;;  %v2442_v24 = vld [vmem:[%s4771_s0 + $0x190] sm:$0xff] }
   0x4   :  { %83 = vadd.xlane.f32.xlu0 %v82_v5  ;;  %v2405_v13 = vld [vmem:[%s4771_s0 + $0x180] sm:$0xff]  ;;  %v130_v15 = vsel %vm81_vm0, %v2400_v12, 0.0  ;;  %v2426_v19 = vld [vmem:[%s4771_s0 + $0x88] sm:$0xff]  ;;  %v229_v21 = vsel %vm81_vm0, %v2421_v18, 0.0  ;;  %v2447_v25 = vld [vmem:[%s4771_s0 + $0x90] sm:$0xff]  ;;  %v232_v27 = vsel %vm81_vm0, %v2442_v24, 0.0 }
   0x5   :  { %v2410_v14 = vld [vmem:[%s4771_s0 + $0x100] sm:$0xff]  ;;  %v226_v16 = vsel %vm81_vm0, %v2405_v13, 0.0  ;;  %v2431_v20 = vld [vmem:[%s4771_s0 + $0x108] sm:$0xff]  ;;  %v133_v22 = vsel %vm81_vm0, %v2426_v19, 0.0  ;;  %v2452_v26 = vld [vmem:[%s4771_s0 + $0x110] sm:$0xff]  ;;  %v136_v28 = vsel %vm81_vm0, %v2447_v25, 0.0 }
   0x6   :  { %v178_v17 = vsel %vm81_vm0, %v2410_v14, 0.0  ;;  %v181_v23 = vsel %vm81_vm0, %v2431_v20, 0.0  ;;  %v184_v29 = vsel %vm81_vm0, %v2452_v26, 0.0  ;;  %v2463_v30 = vld [vmem:[%s4771_s0 + $0x198] sm:$0xff]  ;;  %v2484_v36 = vld [vmem:[%s4771_s0 + $0x1a0] sm:$0xff]  ;;  %v2505_v42 = vld [vmem:[%s4771_s0 + $0x1a8] sm:$0xff] }
   0x7   :  { %v2468_v31 = vld [vmem:[%s4771_s0 + $0x98] sm:$0xff]  ;;  %v235_v33 = vsel %vm81_vm0, %v2463_v30, 0.0  ;;  %v2489_v37 = vld [vmem:[%s4771_s0 + $0xa0] sm:$0xff]  ;;  %v238_v39 = vsel %vm81_vm0, %v2484_v36, 0.0  ;;  %v2510_v43 = vld [vmem:[%s4771_s0 + $0xa8] sm:$0xff]  ;;  %v241_v45 = vsel %vm81_vm0, %v2505_v42, 0.0 }
   0x8   :  { %v2473_v32 = vld [vmem:[%s4771_s0 + $0x118] sm:$0xff]  ;;  %v139_v34 = vsel %vm81_vm0, %v2468_v31, 0.0  ;;  %v2494_v38 = vld [vmem:[%s4771_s0 + $0x120] sm:$0xff]  ;;  %v142_v40 = vsel %vm81_vm0, %v2489_v37, 0.0  ;;  %v2515_v44 = vld [vmem:[%s4771_s0 + $0x128] sm:$0xff]  ;;  %v145_v46 = vsel %vm81_vm0, %v2510_v43, 0.0 }
   0x9   :  { %v187_v35 = vsel %vm81_vm0, %v2473_v32, 0.0  ;;  %v190_v41 = vsel %vm81_vm0, %v2494_v38, 0.0  ;;  %v193_v47 = vsel %vm81_vm0, %v2515_v44, 0.0  ;;  %v2526_v48 = vld [vmem:[%s4771_s0 + $0x130] sm:$0xff]  ;;  %v2547_v54 = vld [vmem:[%s4771_s0 + $0x1b8] sm:$0xff]  ;;  %v2575_v62 = vld [vmem:[%s4771_s0 + $0x1c0] sm:$0xff] }
   0xa   :  { %v2531_v49 = vld [vmem:[%s4771_s0 + $0xb0] sm:$0xff]  ;;  %v196_v51 = vsel %vm81_vm0, %v2526_v48, 0.0  ;;  %v247_v55 = vsel %vm81_vm0, %v2547_v54, 0.0  ;;  %v2554_v56 = vld [vmem:[%s4771_s0 + $0x138] sm:$0xff]  ;;  %v250_v3 = vsel %vm81_vm0, %v2575_v62, 0.0  ;;  %v2589_v5 = vld [vmem:[%s4771_s0 + $0xc0] sm:$0xff] }
   0xb   :  { %98 = vadd.xlane.f32.xlu2 %v97_v9  ;;  %92 = vadd.xlane.f32.xlu1 %v91_v10  ;;  %v2536_v50 = vld [vmem:[%s4771_s0 + $0x1b0] sm:$0xff]  ;;  %v148_v52 = vsel %vm81_vm0, %v2531_v49, 0.0  ;;  %v199_v58 = vsel %vm81_vm0, %v2554_v56, 0.0  ;;  %v2568_v60 = vld [vmem:[%s4771_s0 + $0x38] sm:$0xff]  ;;  %v154_v9 = vsel %vm81_vm0, %v2589_v5, 0.0  ;;  %v2596_v10 = vld [vmem:[%s4771_s0 + $0x40] sm:$0xff] }
   0xc   :  { %86 = vadd.xlane.f32.xlu0 %v85_v11  ;;  %v244_v53 = vsel %vm81_vm0, %v2536_v50, 0.0  ;;  %v2559_v57 = vld [vmem:[%s4771_s0 + $0x30] sm:$0xff]  ;;  %v103_v61 = vsel %vm81_vm0, %v2568_v60, 0.0  ;;  %v2580_v63 = vld [vmem:[%s4771_s0 + $0xb8] sm:$0xff]  ;;  %v2601_v11 = vld [vmem:[%s4771_s0 + $0x140] sm:$0xff] }
   0xd   :  { %v100_v59 = vsel %vm81_vm0, %v2559_v57, 0.0  ;;  %v151_v4 = vsel %vm81_vm0, %v2580_v63, 0.0 }
  0x13   :  { %131 = vadd.xlane.f32.xlu2 %v130_v15  ;;  %227 = vadd.xlane.f32.xlu1 %v226_v16  ;;  %v106_v15 = vsel %vm81_vm0, %v2596_v10, 0.0  ;;  %v202_v16 = vsel %vm81_vm0, %v2601_v11, 0.0 }
  0x14   :  { %179 = vadd.xlane.f32.xlu0 %v178_v17  ;;  %v2329_v17 = vmov 8.0  }
  0x15   :  { %2174 = vrcp.f32 %v2329_v17 }
  0x1b   :  { %230 = vadd.xlane.f32.xlu1 %v229_v21  ;;  %134 = vadd.xlane.f32.xlu2 %v133_v22  ;;  %v2175_v21 = vpop.eup %2174 }
  0x1c   :  { %182 = vadd.xlane.f32.xlu0 %v181_v23  ;;  %v275_v22 = vmul.f32 8.0, %v2175_v21  ;;  %vm279_vm1 = vweird.f32 %v2175_v21 }
  0x23   :  { %233 = vadd.xlane.f32.xlu1 %v232_v27  ;;  %137 = vadd.xlane.f32.xlu2 %v136_v28 }
  0x24   :  { %185 = vadd.xlane.f32.xlu0 %v184_v29  ;;  %v276_v29 = vsub.f32 1.0, %v275_v22 }
  0x2b   :  { %236 = vadd.xlane.f32.xlu1 %v235_v33  ;;  %140 = vadd.xlane.f32.xlu2 %v139_v34  ;;  %v277_v33 = vmul.f32 %v2175_v21, %v276_v29 }
  0x2c   :  { %188 = vadd.xlane.f32.xlu0 %v187_v35 }
  0x33   :  { %239 = vadd.xlane.f32.xlu1 %v238_v39  ;;  %143 = vadd.xlane.f32.xlu2 %v142_v40  ;;  %v278_v40 = vadd.f32 %v2175_v21, %v277_v33 }
  0x34   :  { %191 = vadd.xlane.f32.xlu0 %v190_v41 }
  0x35   :  { %v2613_v41 = vsel %vm279_vm1, %v2175_v21, %v278_v40 }
  0x3b   :  { %242 = vadd.xlane.f32.xlu1 %v241_v45  ;;  %146 = vadd.xlane.f32.xlu2 %v145_v46 }
  0x3c   :  { %194 = vadd.xlane.f32.xlu0 %v193_v47 }
  0x43   :  { %197 = vadd.xlane.f32.xlu2 %v196_v51  ;;  %149 = vadd.xlane.f32.xlu1 %v148_v52 }
  0x44   :  { %245 = vadd.xlane.f32.xlu0 %v244_v53 }
  0x4b   :  { %248 = vadd.xlane.f32.xlu2 %v247_v55  ;;  %200 = vadd.xlane.f32.xlu1 %v199_v58 }
  0x4c   :  { %101 = vadd.xlane.f32.xlu0 %v100_v59 }
  0x53   :  { %104 = vadd.xlane.f32.xlu2 %v103_v61  ;;  %251 = vadd.xlane.f32.xlu1 %v250_v3 }
  0x54   :  { %152 = vadd.xlane.f32.xlu0 %v151_v4 }
  0x5b   :  { %155 = vadd.xlane.f32.xlu2 %v154_v9  ;;  %107 = vadd.xlane.f32.xlu1 %v106_v15 }
  0x5c   :  { %203 = vadd.xlane.f32.xlu0 %v202_v16 }
  0x76   :  { %v2607_v23 = vpop.xlane.xlu2 %95  ;;  %v90_v27 = vpop.xlane.xlu1 %89 }
  0x77   :  { %v84_v28 = vpop.xlane.xlu0 %83 }
  0x78   :  { %v281_v55 = vmul.f32 %v2613_v41, %v84_v28 }
  0x7a   :  { %v2635_v15 = vsub.f32 %v2368_v2, %v281_v55 }
  0x7c   :  { %v409_v33 = vmul.f32 %v2635_v15, %v2635_v15 }
  0x7e   :  { %v2609_v34 = vpop.xlane.xlu2 %98  ;;  %v2611_v35 = vpop.xlane.xlu1 %92 }
  0x7f   :  { %v87_v39 = vpop.xlane.xlu0 %86 }
  0x80   :  { %v282_v40 = vmul.f32 %v2613_v41, %v87_v39 }
  0x86   :  { %v132_v45 = vpop.xlane.xlu2 %131  ;;  %v228_v46 = vpop.xlane.xlu1 %227 }
  0x87   :  { %v297_v47 = vmul.f32 %v2613_v41, %v132_v45  ;;  %v329_v51 = vmul.f32 %v2613_v41, %v228_v46  ;;  %v180_v52 = vpop.xlane.xlu0 %179 }
  0x88   :  { %v313_v53 = vmul.f32 %v2613_v41, %v180_v52 }
  0x89   :  { %v2620_v58 = vsub.f32 %v2400_v12, %v297_v47  ;;  %v2623_v59 = vsub.f32 %v2405_v13, %v329_v51 }
  0x8a   :  { %v2626_v61 = vsub.f32 %v2410_v14, %v313_v53  ;;  %v2662_v53 = vsub.f32 %v2389_v8, %v282_v40 }
  0x8b   :  { %v425_v3 = vmul.f32 %v2620_v58, %v2620_v58  ;;  %v457_v4 = vmul.f32 %v2623_v59, %v2623_v59 }
  0x8c   :  { %v441_v9 = vmul.f32 %v2626_v61, %v2626_v61 }
  0x8d   :  { %v521_v12 = vsel %vm81_vm0, %v425_v3, 0.0  ;;  %v617_v13 = vsel %vm81_vm0, %v457_v4, 0.0 }
  0x8e   :  { %522 = vadd.xlane.f32.xlu2 %v521_v12  ;;  %618 = vadd.xlane.f32.xlu1 %v617_v13  ;;  %v231_v14 = vpop.xlane.xlu1 %230  ;;  %v569_v16 = vsel %vm81_vm0, %v441_v9, 0.0  ;;  %v135_v17 = vpop.xlane.xlu2 %134  ;;  %v283_v13 = vmul.f32 %v2613_v41, %v90_v27 }
  0x8f   :  { %v330_v21 = vmul.f32 %v2613_v41, %v231_v14  ;;  %570 = vadd.xlane.f32.xlu0 %v569_v16  ;;  %v183_v22 = vpop.xlane.xlu0 %182  ;;  %v298_v28 = vmul.f32 %v2613_v41, %v135_v17  ;;  %v410_v14 = vmul.f32 %v2662_v53, %v2662_v53 }
  0x90   :  { %v314_v29 = vmul.f32 %v2613_v41, %v183_v22 }
  0x91   :  { %v2644_v2 = vsub.f32 %v2421_v18, %v330_v21  ;;  %v2653_v46 = vsub.f32 %v2426_v19, %v298_v28  ;;  %v473_v18 = vsel %vm81_vm0, %v409_v33, 0.0  ;;  %v476_v27 = vsel %vm81_vm0, %v410_v14, 0.0 }
  0x92   :  { %v2650_v45 = vsub.f32 %v2431_v20, %v314_v29 }
  0x93   :  { %v458_v47 = vmul.f32 %v2644_v2, %v2644_v2  ;;  %v426_v3 = vmul.f32 %v2653_v46, %v2653_v46 }
  0x94   :  { %v442_v51 = vmul.f32 %v2650_v45, %v2650_v45 }
  0x95   :  { %v620_v52 = vsel %vm81_vm0, %v458_v47, 0.0  ;;  %v524_v16 = vsel %vm81_vm0, %v426_v3, 0.0 }
  0x96   :  { %v234_v39 = vpop.xlane.xlu1 %233  ;;  %474 = vadd.xlane.f32.xlu1 %v473_v18  ;;  %v572_v20 = vsel %vm81_vm0, %v442_v51, 0.0  ;;  %v138_v55 = vpop.xlane.xlu2 %137 }
  0x97   :  { %v331_v19 = vmul.f32 %v2613_v41, %v234_v39  ;;  %621 = vadd.xlane.f32.xlu0 %v620_v52  ;;  %573 = vadd.xlane.f32.xlu2 %v572_v20  ;;  %v186_v4 = vpop.xlane.xlu0 %185  ;;  %v299_v9 = vmul.f32 %v2613_v41, %v138_v55 }
  0x98   :  { %v315_v12 = vmul.f32 %v2613_v41, %v186_v4  ;;  %v284_v4 = vmul.f32 %v2613_v41, %v2611_v35 }
  0x99   :  { %v2671_v8 = vsub.f32 %v2442_v24, %v331_v19  ;;  %v2683_v22 = vsub.f32 %v2447_v25, %v299_v9  ;;  %v2687_v24 = vsub.f32 %v2363_v1, %v283_v13 }
  0x9a   :  { %v2680_v21 = vsub.f32 %v2452_v26, %v315_v12 }
  0x9b   :  { %v459_v17 = vmul.f32 %v2671_v8, %v2671_v8  ;;  %v427_v25 = vmul.f32 %v2683_v22, %v2683_v22  ;;  %v411_v1 = vmul.f32 %v2687_v24, %v2687_v24 }
  0x9c   :  { %v443_v26 = vmul.f32 %v2680_v21, %v2680_v21 }
  0x9d   :  { %v623_v28 = vsel %vm81_vm0, %v459_v17, 0.0  ;;  %v527_v52 = vsel %vm81_vm0, %v427_v25, 0.0  ;;  %v479_v55 = vsel %vm81_vm0, %v411_v1, 0.0 }
  0x9e   :  { %525 = vadd.xlane.f32.xlu1 %v524_v16  ;;  %v237_v29 = vpop.xlane.xlu1 %236  ;;  %v575_v18 = vsel %vm81_vm0, %v443_v26, 0.0  ;;  %v141_v20 = vpop.xlane.xlu2 %140  ;;  %v2727_v16 = vsub.f32 %v2384_v7, %v284_v4  ;;  %v2778_v4 = vld [vmem:[%s4771_s0 + $0x1d0] sm:$0xff] }
  0x9f   :  { %477 = vadd.xlane.f32.xlu0 %v476_v27  ;;  %624 = vadd.xlane.f32.xlu2 %v623_v28  ;;  %v332_v33 = vmul.f32 %v2613_v41, %v237_v29  ;;  %v189_v40 = vpop.xlane.xlu0 %188  ;;  %v300_v3 = vmul.f32 %v2613_v41, %v141_v20  ;;  %v2737_v27 = vld [vmem:[%s4771_s0 + $0x1c8] sm:$0xff] }
  0xa0   :  { %v316_v47 = vmul.f32 %v2613_v41, %v189_v40  ;;  %v253_v29 = vsel %vm81_vm0, %v2737_v27, 0.0 }
  0xa1   :  { %v2699_v51 = vsub.f32 %v2463_v30, %v332_v33  ;;  %v2721_v12 = vsub.f32 %v2468_v31, %v300_v3  ;;  %v412_v31 = vmul.f32 %v2727_v16, %v2727_v16 }
  0xa2   :  { %v2704_v39 = vsub.f32 %v2473_v32, %v316_v47  ;;  %v2717_v32 = vld [vmem:[%s4771_s0 + $0x148] sm:$0xff] }
  0xa3   :  { %v460_v19 = vmul.f32 %v2699_v51, %v2699_v51  ;;  %v205_v13 = vsel %vm81_vm0, %v2717_v32, 0.0  ;;  %v428_v35 = vmul.f32 %v2721_v12, %v2721_v12  ;;  %v482_v26 = vsel %vm81_vm0, %v412_v31, 0.0  ;;  %v2750_v47 = vld [vmem:[%s4771_s0 + $0xc8] sm:$0xff] }
  0xa4   :  { %v444_v30 = vmul.f32 %v2704_v39, %v2704_v39 }
  0xa5   :  { %v626_v9 = vsel %vm81_vm0, %v460_v19, 0.0  ;;  %v530_v7 = vsel %vm81_vm0, %v428_v35, 0.0  ;;  %v256_v35 = vsel %vm81_vm0, %v2778_v4, 0.0 }
  0xa6   :  { %576 = vadd.xlane.f32.xlu1 %v575_v18  ;;  %v578_v14 = vsel %vm81_vm0, %v444_v30, 0.0  ;;  %v240_v40 = vpop.xlane.xlu1 %239  ;;  %v157_v18 = vsel %vm81_vm0, %v2750_v47, 0.0  ;;  %v144_v19 = vpop.xlane.xlu2 %143  ;;  %v2771_v30 = vld [vmem:[%s4771_s0 + $0x150] sm:$0xff] }
  0xa7   :  { %528 = vadd.xlane.f32.xlu0 %v527_v52  ;;  %480 = vadd.xlane.f32.xlu2 %v479_v55  ;;  %v192_v17 = vpop.xlane.xlu0 %191  ;;  %v333_v25 = vmul.f32 %v2613_v41, %v240_v40  ;;  %v301_v3 = vmul.f32 %v2613_v41, %v144_v19 }
  0xa8   :  { %v317_v28 = vmul.f32 %v2613_v41, %v192_v17 }
  0xa9   :  { %v2762_v52 = vsub.f32 %v2484_v36, %v333_v25 }
  0xaa   :  { %v2743_v33 = vsub.f32 %v2494_v38, %v317_v28  ;;  %v2757_v38 = vld [vmem:[%s4771_s0 + $0x48] sm:$0xff] }
  0xab   :  { %v109_v20 = vsel %vm81_vm0, %v2757_v38, 0.0  ;;  %v461_v36 = vmul.f32 %v2762_v52, %v2762_v52 }
  0xac   :  { %v445_v1 = vmul.f32 %v2743_v33, %v2743_v33 }
  0xad   :  { %v629_v17 = vsel %vm81_vm0, %v461_v36, 0.0 }
  0xae   :  { %627 = vadd.xlane.f32.xlu1 %v626_v9  ;;  %v581_v55 = vsel %vm81_vm0, %v445_v1, 0.0  ;;  %v285_v9 = vmul.f32 %v2613_v41, %v2607_v23  ;;  %v243_v31 = vpop.xlane.xlu1 %242  ;;  %v147_v19 = vpop.xlane.xlu2 %146 }
  0xaf   :  { %206 = vadd.xlane.f32.xlu2 %v205_v13  ;;  %579 = vadd.xlane.f32.xlu0 %v578_v14  ;;  %v2783_v13 = vsub.f32 %v2489_v37, %v301_v3  ;;  %v208_v14 = vsel %vm81_vm0, %v2771_v30, 0.0  ;;  %v195_v28 = vpop.xlane.xlu0 %194 }
  0xb0   :  { %v318_v23 = vmul.f32 %v2613_v41, %v195_v28  ;;  %v76_v28 = vld [vmem:[%s4771_s0 + $0x1d8] sm:$0xff] }
  0xb1   :  { %4793 = vst [vmem:[#allocation2_spill] sm:$0xff] %v2783_v13  ;;  %v429_v37 = vmul.f32 %v2783_v13, %v2783_v13 }
  0xb2   :  { %v2806_v25 = vsub.f32 %v2515_v44, %v318_v23  ;;  %v286_v44 = vmul.f32 %v2613_v41, %v2609_v34  ;;  %v60_v34 = vld [vmem:[%s4771_s0 + $0x158] sm:$0xff] }
  0xb4   :  { %4794 = vst [vmem:[#allocation3_spill] sm:$0xff] %v2806_v25 }
  0xb6   :  { %483 = vadd.xlane.f32.xlu1 %v482_v26  ;;  %v2800_v26 = vld [vmem:[%s4771_s0 + $0x50] sm:$0xff] }
  0xb7   :  { %531 = vadd.xlane.f32.xlu2 %v530_v7  ;;  %254 = vadd.xlane.f32.xlu0 %v253_v29  ;;  %v2791_v7 = vsub.f32 %v2358_v0, %v285_v9  ;;  %v334_v29 = vmul.f32 %v2613_v41, %v243_v31  ;;  %v533_v0 = vsel %vm81_vm0, %v429_v37, 0.0  ;;  %v198_v31 = vpop.xlane.xlu2 %197  ;;  %v150_v37 = vpop.xlane.xlu1 %149 }
  0xb9   :  { %v413_v40 = vmul.f32 %v2791_v7, %v2791_v7  ;;  %v2809_v1 = vsub.f32 %v2505_v42, %v334_v29  ;;  %v43_v42 = vld [vmem:[%s4771_s0 + $0xd0] sm:$0xff]  ;;  %v259_v29 = vsel %vm81_vm0, %v76_v28, 0.0 }
  0xba   :  { %v160_v9 = vsel %vm81_vm0, %v43_v42, 0.0 }
  0xbb   :  { %4795 = vst [vmem:[#allocation4_spill] sm:$0xff] %v2809_v1  ;;  %v462_v3 = vmul.f32 %v2809_v1, %v2809_v1 }
  0xbe   :  { %158 = vadd.xlane.f32.xlu1 %v157_v18  ;;  %v112_v18 = vsel %vm81_vm0, %v2800_v26, 0.0 }
  0xbf   :  { %110 = vadd.xlane.f32.xlu0 %v109_v20  ;;  %582 = vadd.xlane.f32.xlu2 %v581_v55  ;;  %v485_v20 = vsel %vm81_vm0, %v413_v40, 0.0  ;;  %v446_v55 = vmul.f32 %v2806_v25, %v2806_v25 }
  0xc1   :  { %v584_v36 = vsel %vm81_vm0, %v446_v55, 0.0 }
  0xc6   :  { %209 = vadd.xlane.f32.xlu1 %v208_v14  ;;  %v632_v14 = vsel %vm81_vm0, %v462_v3, 0.0 }
  0xc7   :  { %630 = vadd.xlane.f32.xlu0 %v629_v17  ;;  %257 = vadd.xlane.f32.xlu2 %v256_v35  ;;  %v2827_v17 = vsub.f32 %v2379_v6, %v286_v44  ;;  %v302_v35 = vmul.f32 %v2613_v41, %v147_v19  ;;  %v246_v6 = vpop.xlane.xlu0 %245  ;;  %v28_v19 = vld [vmem:[%s4771_s0 + $0x58] sm:$0xff]  ;;  %v249_v44 = vpop.xlane.xlu2 %248 }
  0xc8   :  { %v335_v3 = vmul.f32 %v2613_v41, %v246_v6  ;;  %v115_v42 = vsel %vm81_vm0, %v28_v19, 0.0 }
  0xc9   :  { %4796 = vst [vmem:[#allocation5_spill] sm:$0xff] %v2827_v17  ;;  %v414_v23 = vmul.f32 %v2827_v17, %v2827_v17  ;;  %v2840_v40 = vsub.f32 %v2510_v43, %v302_v35  ;;  %v44_v43 = vld [vmem:[%s4771_s0 + $0xd8] sm:$0xff] }
  0xca   :  { %v163_v35 = vsel %vm81_vm0, %v44_v43, 0.0 }
  0xcb   :  { %4797 = vst [vmem:[#allocation6_spill] sm:$0xff] %v2840_v40  ;;  %v430_v55 = vmul.f32 %v2840_v40, %v2840_v40 }
  0xce   :  { %534 = vadd.xlane.f32.xlu1 %v533_v0  ;;  %v211_v0 = vsel %vm81_vm0, %v60_v34, 0.0  ;;  %v2861_v34 = vsub.f32 %v2536_v50, %v335_v3 }
  0xcf   :  { %486 = vadd.xlane.f32.xlu0 %v485_v20  ;;  %113 = vadd.xlane.f32.xlu2 %v112_v18  ;;  %v488_v18 = vsel %vm81_vm0, %v414_v23, 0.0  ;;  %v319_v20 = vmul.f32 %v2613_v41, %v198_v31  ;;  %v102_v28 = vpop.xlane.xlu0 %101 }
  0xd0   :  { %4799 = vst [vmem:[#allocation8_spill] sm:$0xff] %v2861_v34  ;;  %v287_v23 = vmul.f32 %v2613_v41, %v102_v28  ;;  %v463_v6 = vmul.f32 %v2861_v34, %v2861_v34 }
  0xd6   :  { %585 = vadd.xlane.f32.xlu1 %v584_v36  ;;  %v201_v36 = vpop.xlane.xlu1 %200 }
  0xd7   :  { %161 = vadd.xlane.f32.xlu0 %v160_v9  ;;  %633 = vadd.xlane.f32.xlu2 %v632_v14  ;;  %v2856_v9 = vsub.f32 %v2526_v48, %v319_v20  ;;  %v536_v14 = vsel %vm81_vm0, %v430_v55, 0.0  ;;  %v61_v48 = vld [vmem:[%s4771_s0 + $0x160] sm:$0xff]  ;;  %v635_v20 = vsel %vm81_vm0, %v463_v6, 0.0  ;;  %v105_v55 = vpop.xlane.xlu2 %104  ;;  %v153_v43 = vpop.xlane.xlu0 %152 }
  0xd9   :  { %4798 = vst [vmem:[#allocation7_spill] sm:$0xff] %v2856_v9  ;;  %v447_v31 = vmul.f32 %v2856_v9, %v2856_v9 }
  0xdb   :  { %v587_v50 = vsel %vm81_vm0, %v447_v31, 0.0 }
  0xde   :  { %260 = vadd.xlane.f32.xlu1 %v259_v29  ;;  %v303_v29 = vmul.f32 %v2613_v41, %v150_v37  ;;  %v252_v19 = vpop.xlane.xlu1 %251  ;;  %v77_v37 = vld [vmem:[%s4771_s0 + $0x1e0] sm:$0xff] }
  0xdf   :  { %212 = vadd.xlane.f32.xlu0 %v211_v0  ;;  %489 = vadd.xlane.f32.xlu2 %v488_v18  ;;  %v214_v0 = vsel %vm81_vm0, %v61_v48, 0.0  ;;  %v2875_v18 = vsub.f32 %v2559_v57, %v287_v23  ;;  %v320_v57 = vmul.f32 %v2613_v41, %v201_v36  ;;  %v156_v23 = vpop.xlane.xlu2 %155  ;;  %v204_v6 = vpop.xlane.xlu0 %203  ;;  %v45_v36 = vld [vmem:[%s4771_s0 + $0xe0] sm:$0xff] }
  0xe0   :  { %v2879_v3 = vsub.f32 %v2531_v49, %v303_v29  ;;  %v29_v29 = vld [vmem:[%s4771_s0 + $0x60] sm:$0xff] }
  0xe1   :  { %4800 = vst [vmem:[#allocation9_spill] sm:$0xff] %v2875_v18  ;;  %v2892_v28 = vsub.f32 %v2554_v56, %v320_v57  ;;  %v304_v57 = vmul.f32 %v2613_v41, %v153_v43 }
  0xe2   :  { %4801 = vst [vmem:[#allocation10_spill] sm:$0xff] %v2879_v3 }
  0xe3   :  { %4802 = vst [vmem:[#allocation11_spill] sm:$0xff] %v2892_v28  ;;  %v448_v56 = vmul.f32 %v2892_v28, %v2892_v28 }
  0xe6   :  { %116 = vadd.xlane.f32.xlu1 %v115_v42  ;;  %v415_v42 = vmul.f32 %v2875_v18, %v2875_v18  ;;  %v108_v48 = vpop.xlane.xlu1 %107 }
  0xe7   :  { %537 = vadd.xlane.f32.xlu0 %v536_v14  ;;  %164 = vadd.xlane.f32.xlu2 %v163_v35  ;;  %v431_v14 = vmul.f32 %v2879_v3, %v2879_v3  ;;  %v262_v35 = vsel %vm81_vm0, %v77_v37, 0.0 }
  0xe8   :  { %v491_v49 = vsel %vm81_vm0, %v415_v42, 0.0  ;;  %v590_v42 = vsel %vm81_vm0, %v448_v56, 0.0 }
  0xe9   :  { %v539_v31 = vsel %vm81_vm0, %v431_v14, 0.0 }
  0xee   :  { %636 = vadd.xlane.f32.xlu1 %v635_v20  ;;  %v118_v20 = vsel %vm81_vm0, %v29_v29, 0.0 }
  0xef   :  { %588 = vadd.xlane.f32.xlu0 %v587_v50  ;;  %215 = vadd.xlane.f32.xlu2 %v214_v0  ;;  %v336_v50 = vmul.f32 %v2613_v41, %v249_v44  ;;  %v166_v0 = vsel %vm81_vm0, %v45_v36, 0.0  ;;  %v62_v44 = vld [vmem:[%s4771_s0 + $0x168] sm:$0xff] }
  0xf1   :  { %v2907_v37 = vsub.f32 %v2547_v54, %v336_v50  ;;  %v288_v54 = vmul.f32 %v2613_v41, %v105_v55  ;;  %v1633_v50 = vld [vmem:[%s4774_s3] sm:$0xff]  ;;  %v2928_v55 = vsub.f32 %v2580_v63, %v304_v57  ;;  %v289_v57 = vmul.f32 %v2613_v41, %v108_v48 }
  0xf2   :  { %2168 = vmatpush.msra.mxu1 %v1633_v50  ;;  %2169 = vmatpush.msra.mxu2 %v1633_v50 }
  0xf3   :  { %4803 = vst [vmem:[#allocation12_spill] sm:$0xff] %v2907_v37  ;;  %v464_v43 = vmul.f32 %v2907_v37, %v2907_v37  ;;  %2170 = vmatpush.msra.mxu3 %v1633_v50  ;;  %1841 = vmatpush.msra.mxu0 %v1633_v50  ;;  %v2963_v50 = vsub.f32 %v2596_v10, %v289_v57 }
  0xf4   :  { %4804 = vst [vmem:[#allocation13_spill] sm:$0xff] %v2928_v55 }
  0xf5   :  { %v638_v63 = vsel %vm81_vm0, %v464_v43, 0.0  ;;  %4808 = vst [vmem:[#allocation17_spill] sm:$0xff] %v2963_v50 }
  0xf6   :  { %492 = vadd.xlane.f32.xlu1 %v491_v49  ;;  %v78_v49 = vld [vmem:[%s4771_s0 + $0x1e8] sm:$0xff] }
  0xf7   :  { %263 = vadd.xlane.f32.xlu0 %v262_v35  ;;  %540 = vadd.xlane.f32.xlu2 %v539_v31 }
  0xfe   :  { %167 = vadd.xlane.f32.xlu1 %v166_v0  ;;  %v217_v0 = vsel %vm81_vm0, %v62_v44, 0.0  ;;  %v321_v44 = vmul.f32 %v2613_v41, %v204_v6 }
  0xff   :  { %119 = vadd.xlane.f32.xlu0 %v118_v20  ;;  %591 = vadd.xlane.f32.xlu2 %v590_v42 }
 0x100   :  { %v2957_v48 = vsub.f32 %v2601_v11, %v321_v44 }
 0x101   :  { %v523_v14 = vpop.xlane.xlu2 %522  ;;  %v619_v35 = vpop.xlane.xlu1 %618 }
 0x102   :  { %v681_v31 = vmul.f32 %v523_v14, %v2613_v41  ;;  %v713_v36 = vmul.f32 %v619_v35, %v2613_v41  ;;  %v571_v29 = vpop.xlane.xlu0 %570  ;;  %v265_v14 = vsel %vm81_vm0, %v78_v49, 0.0  ;;  %v337_v35 = vmul.f32 %v2613_v41, %v252_v19  ;;  %4807 = vst [vmem:[#allocation16_spill] sm:$0xff] %v2957_v48 }
 0x103   :  { %v697_v56 = vmul.f32 %v571_v29, %v2613_v41  ;;  %v2939_v29 = vsub.f32 %v2568_v60, %v288_v54  ;;  %v305_v19 = vmul.f32 %v2613_v41, %v156_v23  ;;  %v432_v60 = vmul.f32 %v2928_v55, %v2928_v55  ;;  %v30_v54 = vld [vmem:[%s4771_s0 + $0x68] sm:$0xff] }
 0x104   :  { %v2930_v20 = vadd.f32 1e-05, %v681_v31  ;;  %v2932_v42 = vadd.f32 1e-05, %v713_v36  ;;  %v2951_v6 = vsub.f32 %v2575_v62, %v337_v35  ;;  %v121_v35 = vsel %vm81_vm0, %v30_v54, 0.0 }
 0x105   :  { %v2936_v37 = vadd.f32 1e-05, %v697_v56  ;;  %4805 = vst [vmem:[#allocation14_spill] sm:$0xff] %v2939_v29  ;;  %v416_v43 = vmul.f32 %v2939_v29, %v2939_v29  ;;  %v542_v44 = vsel %vm81_vm0, %v432_v60, 0.0  ;;  %v449_v54 = vmul.f32 %v2957_v48, %v2957_v48 }
 0x106   :  { %2176 = vrsqrt.f32 %v2930_v20  ;;  %218 = vadd.xlane.f32.xlu1 %v217_v0  ;;  %4806 = vst [vmem:[#allocation15_spill] sm:$0xff] %v2951_v6  ;;  %vm959_vm2 = vweird.f32 %v2930_v20  ;;  %vm1279_vm4 = vweird.f32 %v2932_v42 }
 0x107   :  { %2178 = vrsqrt.f32 %v2932_v42  ;;  %639 = vadd.xlane.f32.xlu0 %v638_v63  ;;  %266 = vadd.xlane.f32.xlu2 %v265_v14  ;;  %v2970_v14 = vsub.f32 %v2589_v5, %v305_v19  ;;  %v494_v60 = vsel %vm81_vm0, %v416_v43, 0.0  ;;  %v46_v43 = vld [vmem:[%s4771_s0 + $0xe8] sm:$0xff]  ;;  %vm1119_vm6 = vweird.f32 %v2936_v37 }
 0x108   :  { %2180 = vrsqrt.f32 %v2936_v37  ;;  %v169_v3 = vsel %vm81_vm0, %v46_v43, 0.0 }
 0x109   :  { %v475_v49 = vpop.xlane.xlu1 %474  ;;  %4809 = vst [vmem:[#allocation18_spill] sm:$0xff] %v2970_v14  ;;  %v433_v48 = vmul.f32 %v2970_v14, %v2970_v14 }
 0x10a   :  { %v665_v31 = vmul.f32 %v475_v49, %v2613_v41  ;;  %v574_v36 = vpop.xlane.xlu2 %573  ;;  %v622_v23 = vpop.xlane.xlu0 %621 }
 0x10b   :  { %v698_v62 = vmul.f32 %v574_v36, %v2613_v41  ;;  %v714_v56 = vmul.f32 %v622_v23, %v2613_v41  ;;  %v465_v36 = vmul.f32 %v2951_v6, %v2951_v6  ;;  %v3031_v43 = vsel %vm81_vm0, %v433_v48, 0.0 }
 0x10c   :  { %v2967_v0 = vpop.eup %2176  ;;  %v2972_v11 = vadd.f32 1e-05, %v665_v31 }
 0x10d   :  { %v2976_v63 = vpop.eup %2178  ;;  %v954_v10 = vmul.f32 %v2967_v0, %v2930_v20  ;;  %v2980_v57 = vadd.f32 1e-05, %v698_v62  ;;  %v2982_v49 = vadd.f32 1e-05, %v714_v56  ;;  %v417_v62 = vmul.f32 %v2963_v50, %v2963_v50 }
 0x10e   :  { %v2986_v5 = vpop.eup %2180  ;;  %v1274_v19 = vmul.f32 %v2976_v63, %v2932_v42  ;;  %2182 = vrsqrt.f32 %v2972_v11  ;;  %543 = vadd.xlane.f32.xlu1 %v542_v44  ;;  %v641_v50 = vsel %vm81_vm0, %v465_v36, 0.0  ;;  %vm960_vm3 = vweird.f32 %v2967_v0 }
 0x10f   :  { %v955_v31 = vmul.f32 %v2967_v0, %v954_v10  ;;  %v1114_v23 = vmul.f32 %v2986_v5, %v2936_v37  ;;  %2184 = vrsqrt.f32 %v2980_v57  ;;  %495 = vadd.xlane.f32.xlu0 %v494_v60  ;;  %122 = vadd.xlane.f32.xlu2 %v121_v35  ;;  %vm3047_vm5 = vmor %vm959_vm2, %vm960_vm3  ;;  %vm1280_vm7 = vweird.f32 %v2976_v63 }
 0x110   :  { %v1275_v56 = vmul.f32 %v2976_v63, %v1274_v19  ;;  %2186 = vrsqrt.f32 %v2982_v49  ;;  %v593_v19 = vsel %vm81_vm0, %v449_v54, 0.0  ;;  %vm1120_vm8 = vweird.f32 %v2986_v5  ;;  %vm3106_vm12 = vmor %vm1279_vm4, %vm1280_vm7 }
 0x111   :  { %v956_v44 = vmul.f32 0.5, %v955_v31  ;;  %v1115_v10 = vmul.f32 %v2986_v5, %v1114_v23  ;;  %v526_v6 = vpop.xlane.xlu1 %525  ;;  %v3013_v31 = vsel %vm81_vm0, %v417_v62, 0.0  ;;  %v63_v62 = vld [vmem:[%s4771_s0 + $0x170] sm:$0xff]  ;;  %vm1129_vm9 = vweird.f32 %v2980_v57  ;;  %vm3122_vm13 = vmor %vm1119_vm6, %vm1120_vm8 }
 0x112   :  { %v682_v35 = vmul.f32 %v526_v6, %v2613_v41  ;;  %v625_v60 = vpop.xlane.xlu2 %624  ;;  %v478_v55 = vpop.xlane.xlu0 %477  ;;  %v1276_v28 = vmul.f32 0.5, %v1275_v56  ;;  %v220_v40 = vsel %vm81_vm0, %v63_v62, 0.0  ;;  %vm799_vm10 = vweird.f32 %v2972_v11 }
 0x113   :  { %v957_v29 = vsub.f32 1.5, %v956_v44  ;;  %v1116_v6 = vmul.f32 0.5, %v1115_v10  ;;  %v715_v56 = vmul.f32 %v625_v60, %v2613_v41  ;;  %vm1289_vm14 = vweird.f32 %v2982_v49 }
 0x114   :  { %v3015_v23 = vpop.eup %2182  ;;  %v3019_v14 = vadd.f32 1e-05, %v682_v35  ;;  %v79_v35 = vld [vmem:[%s4771_s0 + $0x1f0] sm:$0xff]  ;;  %v1277_v60 = vsub.f32 1.5, %v1276_v28 }
 0x115   :  { %v3021_v18 = vpop.eup %2184  ;;  %v958_v36 = vmul.f32 %v2967_v0, %v957_v29  ;;  %v794_v54 = vmul.f32 %v3015_v23, %v2972_v11  ;;  %v666_v29 = vmul.f32 %v478_v55, %v2613_v41  ;;  %v1117_v34 = vsub.f32 1.5, %v1116_v6 }
 0x116   :  { %v3033_v44 = vpop.eup %2186  ;;  %v1124_v10 = vmul.f32 %v3021_v18, %v2980_v57  ;;  %2188 = vrsqrt.f32 %v3019_v14  ;;  %594 = vadd.xlane.f32.xlu1 %v593_v19  ;;  %v3062_v17 = vadd.f32 1e-05, %v715_v56  ;;  %v268_v1 = vsel %vm81_vm0, %v79_v35, 0.0  ;;  %v31_v56 = vld [vmem:[%s4771_s0 + $0x70] sm:$0xff] }
 0x117   :  { %v795_v9 = vmul.f32 %v3015_v23, %v794_v54  ;;  %v1284_v55 = vmul.f32 %v3033_v44, %v2982_v49  ;;  %170 = vadd.xlane.f32.xlu0 %v169_v3  ;;  %v962_v19 = vsel %vm3047_vm5, %v2967_v0, %v958_v36  ;;  %642 = vadd.xlane.f32.xlu2 %v641_v50  ;;  %v47_v3 = vld [vmem:[%s4771_s0 + $0xf0] sm:$0xff]  ;;  %v3069_v6 = vadd.f32 1e-05, %v666_v29 }
 0x118   :  { %v1125_v20 = vmul.f32 %v3021_v18, %v1124_v10  ;;  %v1278_v10 = vmul.f32 %v2976_v63, %v1277_v60  ;;  %2190 = vrsqrt.f32 %v3062_v17  ;;  %v1449_v48 = vmul.f32 %v962_v19, %v2620_v58 }
 0x119   :  { %v1285_v28 = vmul.f32 %v3033_v44, %v1284_v55  ;;  %v577_v54 = vpop.xlane.xlu1 %576  ;;  %v796_v0 = vmul.f32 0.5, %v795_v9  ;;  %v3082_v9 = vld [vmem:[%s4772_s1] ss:$0 sm:$0xff]  ;;  %v1118_v55 = vmul.f32 %v2986_v5, %v1117_v34  ;;  %2192 = vrsqrt.f32 %v3069_v6 }
 0x11a   :  { %v481_v50 = vpop.xlane.xlu2 %480  ;;  %v699_v36 = vmul.f32 %v577_v54, %v2613_v41  ;;  %v529_v62 = vpop.xlane.xlu0 %528  ;;  %v1126_v35 = vmul.f32 0.5, %v1125_v20  ;;  %v3091_v20 = vsel %vm81_vm0, %v47_v3, 0.0  ;;  %vm800_vm11 = vweird.f32 %v3015_v23  ;;  %v3099_v54 = vld [vmem:[%s4773_s2] ss:$0 sm:$0xff] }
 0x11b   :  { %v667_v60 = vmul.f32 %v481_v50, %v2613_v41  ;;  %v1286_v58 = vmul.f32 0.5, %v1285_v28  ;;  %v124_v34 = vsel %vm81_vm0, %v31_v56, 0.0  ;;  %v797_v50 = vsub.f32 1.5, %v796_v0  ;;  %vm3163_vm3 = vmor %vm799_vm10, %vm800_vm11 }
 0x11c   :  { %v3084_v29 = vpop.eup %2188  ;;  %v3112_v25 = vadd.f32 1e-05, %v699_v36  ;;  %v683_v13 = vmul.f32 %v529_v62, %v2613_v41  ;;  %v1282_v56 = vsel %vm3106_vm12, %v2976_v63, %v1278_v10  ;;  %v1127_v0 = vsub.f32 1.5, %v1126_v35 }
 0x11d   :  { %v964_v19 = vmul.f32 %v3084_v29, %v3019_v14  ;;  %v3110_v28 = vadd.f32 1e-05, %v667_v60  ;;  %v1517_v62 = vmul.f32 %v3082_v9, %v1449_v48  ;;  %vm1130_vm15 = vweird.f32 %v3021_v18 }
 0x11e   :  { %269 = vadd.xlane.f32.xlu1 %v268_v1  ;;  %v1122_v1 = vsel %vm3122_vm13, %v2986_v5, %v1118_v55  ;;  %vm1290_vm1 = vweird.f32 %v3033_v44  ;;  %v3136_v37 = vpop.eup %2190  ;;  %v1287_v63 = vsub.f32 1.5, %v1286_v58  ;;  %v3139_v35 = vadd.f32 1e-05, %v683_v13  ;;  %vm3181_vm5 = vmor %vm1129_vm9, %vm1130_vm15 }
 0x11f   :  { %v965_v36 = vmul.f32 %v3084_v29, %v964_v19  ;;  %221 = vadd.xlane.f32.xlu0 %v220_v40  ;;  %2194 = vrsqrt.f32 %v3110_v28  ;;  %498 = vadd.xlane.f32.xlu2 %v3013_v31  ;;  %v3141_v48 = vpop.eup %2192  ;;  %v3144_v5 = vmul.f32 %v3015_v23, %v797_v50  ;;  %v1294_v55 = vmul.f32 %v3136_v37, %v3062_v17  ;;  %vm3202_vm6 = vmor %vm1289_vm14, %vm1290_vm1 }
 0x120   :  { %2196 = vrsqrt.f32 %v3112_v25  ;;  %v1585_v60 = vadd.f32 %v3099_v54, %v1517_v62  ;;  %v1481_v31 = vmul.f32 %v1282_v56, %v2623_v59  ;;  %v1128_v3 = vmul.f32 %v3021_v18, %v1127_v0 }
 0x121   :  { %v966_v10 = vmul.f32 0.5, %v965_v36  ;;  %v628_v40 = vpop.xlane.xlu1 %627  ;;  %v804_v13 = vmul.f32 %v3141_v48, %v3069_v6  ;;  %2198 = vrsqrt.f32 %v3139_v35  ;;  %vm969_vm2 = vweird.f32 %v3019_v14 }
 0x122   :  { %v207_v19 = vpop.xlane.xlu2 %206  ;;  %v580_v58 = vpop.xlane.xlu0 %579  ;;  %v1295_v50 = vmul.f32 %v3136_v37, %v1294_v55  ;;  %2120 = vmatmul.msk.f32.vlgmr.msra.gmra.mxu1 %vm81_vm0, %v1585_v60  ;;  %v1549_v36 = vmul.f32 %v3082_v9, %v1481_v31  ;;  %v1465_v59 = vmul.f32 %v1122_v1, %v2626_v61  ;;  %v1288_v0 = vmul.f32 %v3033_v44, %v1287_v63 }
 0x123   :  { %v967_v42 = vsub.f32 1.5, %v966_v10  ;;  %vm1299_vm4 = vweird.f32 %v3062_v17  ;;  %v805_v62 = vmul.f32 %v3141_v48, %v804_v13  ;;  %v716_v10 = vmul.f32 %v628_v40, %v2613_v41 }
 0x124   :  { %v802_v61 = vsel %vm3163_vm3, %v3015_v23, %v3144_v5  ;;  %v1296_v1 = vmul.f32 0.5, %v1295_v50  ;;  %v1617_v63 = vadd.f32 %v3099_v54, %v1549_v36  ;;  %v1533_v40 = vmul.f32 %v3082_v9, %v1465_v59 }
 0x125   :  { %v3171_v55 = vpop.eup %2194  ;;  %v1132_v23 = vsel %vm3181_vm5, %v3021_v18, %v1128_v3  ;;  %v3193_v5 = vmul.f32 %v3084_v29, %v967_v42  ;;  %v806_v57 = vmul.f32 0.5, %v805_v62  ;;  %vm970_vm7 = vweird.f32 %v3084_v29 }
 0x126   :  { %125 = vadd.xlane.f32.xlu1 %v124_v34  ;;  %v3187_v60 = vpop.eup %2196  ;;  %v814_v31 = vmul.f32 %v3171_v55, %v3110_v28  ;;  %vm809_vm8 = vweird.f32 %v3069_v6  ;;  %2152 = vmatmul.msk.f32.vlgmr.msra.gmra.mxu3 %vm81_vm0, %v1617_v63  ;;  %v1601_v3 = vadd.f32 %v3099_v54, %v1533_v40  ;;  %v1292_v42 = vsel %vm3202_vm6, %v3033_v44, %v1288_v0  ;;  %vm3231_vm10 = vmor %vm969_vm2, %vm970_vm7 }
 0x127   :  { %546 = vadd.xlane.f32.xlu0 %v3031_v43  ;;  %v1134_v18 = vmul.f32 %v3187_v60, %v3112_v25  ;;  %v700_v43 = vmul.f32 %v580_v58, %v2613_v41  ;;  %173 = vadd.xlane.f32.xlu2 %v3091_v20  ;;  %v3214_v49 = vpop.eup %2198  ;;  %vm1300_vm9 = vweird.f32 %v3136_v37  ;;  %v3221_v50 = vadd.f32 1e-05, %v716_v10 }
 0x128   :  { %v815_v13 = vmul.f32 %v3171_v55, %v814_v31  ;;  %v1297_v59 = vsub.f32 1.5, %v1296_v1  ;;  %v807_v56 = vsub.f32 1.5, %v806_v57  ;;  %v974_v20 = vmul.f32 %v3214_v49, %v3139_v35  ;;  %2136 = vmatmul.msk.f32.vlgmr.msra.gmra.mxu2 %vm81_vm0, %v1601_v3  ;;  %vm3263_vm15 = vmor %vm1299_vm4, %vm1300_vm9 }
 0x129   :  { %v484_v36 = vpop.xlane.xlu1 %483  ;;  %v1135_v62 = vmul.f32 %v3187_v60, %v1134_v18  ;;  %vm810_vm11 = vweird.f32 %v3141_v48  ;;  %vm819_vm12 = vweird.f32 %v3110_v28  ;;  %v322_v10 = vmul.f32 %v2613_v41, %v207_v19 }
 0x12a   :  { %v532_v58 = vpop.xlane.xlu2 %531  ;;  %v255_v11 = vpop.xlane.xlu0 %254  ;;  %v816_v0 = vmul.f32 0.5, %v815_v13  ;;  %2200 = vrsqrt.f32 %v3221_v50  ;;  %v972_v1 = vsel %vm3231_vm10, %v3084_v29, %v3193_v5  ;;  %v975_v14 = vmul.f32 %v3214_v49, %v974_v20  ;;  %vm3279_vm2 = vmor %vm809_vm8, %vm810_vm11 }
 0x12b   :  { %v1136_v63 = vmul.f32 0.5, %v1135_v62  ;;  %v3244_v40 = vadd.f32 1e-05, %v700_v43  ;;  %vm820_vm13 = vweird.f32 %v3171_v55  ;;  %v1433_v31 = vmul.f32 %v802_v61, %v2635_v15 }
 0x12c   :  { %v817_v57 = vsub.f32 1.5, %v816_v0  ;;  %v1466_v34 = vmul.f32 %v1132_v23, %v2650_v45  ;;  %v1298_v19 = vmul.f32 %v3136_v37, %v1297_v59  ;;  %v808_v18 = vmul.f32 %v3141_v48, %v807_v56  ;;  %vm3311_vm6 = vmor %vm819_vm12, %vm820_vm13 }
 0x12d   :  { %vm1140_vm14 = vweird.f32 %v3187_v60  ;;  %v976_v3 = vmul.f32 0.5, %v975_v14  ;;  %2202 = vrsqrt.f32 %v3244_v40  ;;  %v3254_v29 = vsub.f32 %v2717_v32, %v322_v10 }
 0x12e   :  { %v1501_v5 = vmul.f32 %v3082_v9, %v1433_v31  ;;  %v1534_v43 = vmul.f32 %v3082_v9, %v1466_v34  ;;  %v1482_v15 = vmul.f32 %v1292_v42, %v2644_v2  ;;  %v3268_v61 = vmul.f32 %v3171_v55, %v817_v57 }
 0x12f   :  { %v1137_v23 = vsub.f32 1.5, %v1136_v63  ;;  %vm1139_vm1 = vweird.f32 %v3112_v25  ;;  %v684_v32 = vmul.f32 %v532_v58, %v2613_v41  ;;  %v668_v13 = vmul.f32 %v484_v36, %v2613_v41 }
 0x130   :  { %v3273_v59 = vpop.eup %2200  ;;  %v977_v17 = vsub.f32 1.5, %v976_v3  ;;  %v1569_v42 = vadd.f32 %v3099_v54, %v1501_v5  ;;  %v1602_v56 = vadd.f32 %v3099_v54, %v1534_v43  ;;  %v1550_v62 = vmul.f32 %v3082_v9, %v1482_v15  ;;  %vm3352_vm8 = vmor %vm1139_vm1, %vm1140_vm14 }
 0x131   :  { %v159_v20 = vpop.xlane.xlu1 %158  ;;  %v1302_v36 = vsel %vm3263_vm15, %v3136_v37, %v1298_v19  ;;  %v812_v6 = vsel %vm3279_vm2, %v3141_v48, %v808_v18  ;;  %vm979_vm3 = vweird.f32 %v3139_v35  ;;  %vm980_vm4 = vweird.f32 %v3214_v49  ;;  %v64_v18 = vld [vmem:[%s4771_s0 + $0x178] sm:$0xff] }
 0x132   :  { %v1304_v58 = vmul.f32 %v3273_v59, %v3221_v50  ;;  %v583_v44 = vpop.xlane.xlu2 %582  ;;  %v111_v0 = vpop.xlane.xlu0 %110  ;;  %vm1309_vm5 = vweird.f32 %v3221_v50  ;;  %2104 = vmatmul.msk.f32.vlgmr.msra.gmra.mxu0 %vm81_vm0, %v1569_v42  ;;  %2137 = vmatmul.msk.f32.gmra.mxu2 %vm81_vm0, %v1602_v56  ;;  %v1618_v37 = vadd.f32 %v3099_v54, %v1550_v62  ;;  %v3300_v10 = vadd.f32 1e-05, %v684_v32  ;;  %vm3378_vm10 = vmor %vm979_vm3, %vm980_vm4 }
 0x133   :  { %v3302_v48 = vadd.f32 1e-05, %v668_v13  ;;  %v338_v63 = vmul.f32 %v2613_v41, %v255_v11  ;;  %v3305_v14 = vpop.eup %2202  ;;  %v3316_v31 = vmul.f32 %v3187_v60, %v1137_v23  ;;  %v1450_v19 = vmul.f32 %v972_v1, %v2653_v46 }
 0x134   :  { %v1305_v34 = vmul.f32 %v3273_v59, %v1304_v58  ;;  %v450_v11 = vmul.f32 %v3254_v29, %v3254_v29  ;;  %v822_v28 = vsel %vm3311_vm6, %v3171_v55, %v3268_v61  ;;  %v3330_v3 = vmul.f32 %v3214_v49, %v977_v17  ;;  %2153 = vmatmul.msk.f32.gmra.mxu3 %vm81_vm0, %v1618_v37 }
 0x135   :  { %v1144_v5 = vmul.f32 %v3305_v14, %v3244_v40  ;;  %2204 = vrsqrt.f32 %v3300_v10  ;;  %vm1310_vm7 = vweird.f32 %v3273_v59  ;;  %v3339_v1 = vsub.f32 %v2737_v27, %v338_v63 }
 0x136   :  { %v1306_v46 = vmul.f32 0.5, %v1305_v34  ;;  %2206 = vrsqrt.f32 %v3302_v48  ;;  %v1518_v43 = vmul.f32 %v3082_v9, %v1450_v19  ;;  %v596_v15 = vsel %vm81_vm0, %v450_v11, 0.0  ;;  %vm3397_vm11 = vmor %vm1309_vm5, %vm1310_vm7 }
 0x137   :  { %v1145_v55 = vmul.f32 %v3305_v14, %v1144_v5  ;;  %v223_v45 = vsel %vm81_vm0, %v64_v18, 0.0  ;;  %597 = vadd.xlane.f32.xlu0 %v596_v15  ;;  %v1434_v23 = vmul.f32 %v812_v6, %v2662_v53  ;;  %v1483_v32 = vmul.f32 %v1302_v36, %v2671_v8 }
 0x138   :  { %v1307_v61 = vsub.f32 1.5, %v1306_v46  ;;  %224 = vadd.xlane.f32.xlu2 %v223_v45  ;;  %v306_v13 = vmul.f32 %v2613_v41, %v159_v20  ;;  %vm1149_vm9 = vweird.f32 %v3244_v40  ;;  %v1586_v17 = vadd.f32 %v3099_v54, %v1518_v43 }
 0x139   :  { %v1146_v2 = vmul.f32 0.5, %v1145_v55  ;;  %v701_v42 = vmul.f32 %v583_v44, %v2613_v41  ;;  %v466_v53 = vmul.f32 %v3339_v1, %v3339_v1  ;;  %v210_v8 = vpop.xlane.xlu1 %209  ;;  %v1142_v25 = vsel %vm3352_vm8, %v3187_v60, %v3316_v31 }
 0x13a   :  { %v3366_v56 = vmul.f32 %v3273_v59, %v1307_v61  ;;  %v1502_v62 = vmul.f32 %v3082_v9, %v1434_v23  ;;  %v1551_v20 = vmul.f32 %v3082_v9, %v1483_v32  ;;  %v258_v36 = vpop.xlane.xlu2 %257  ;;  %v3370_v6 = vpop.xlane.xlu0 %630  ;;  %2121 = vmatmul.msk.f32.gmra.mxu1 %vm81_vm0, %v1586_v17  ;;  %v290_v57 = vmul.f32 %v2613_v41, %v111_v0 }
 0x13b   :  { %v3372_v58 = vpop.eup %2204  ;;  %v1147_v60 = vsub.f32 1.5, %v1146_v2  ;;  %v3383_v37 = vadd.f32 1e-05, %v701_v42  ;;  %v644_v63 = vsel %vm81_vm0, %v466_v53, 0.0  ;;  %v982_v35 = vsel %vm3378_vm10, %v3214_v49, %v3330_v3  ;;  %v80_v49 = vld [vmem:[%s4771_s0 + $0x1f8] sm:$0xff] }
 0x13c   :  { %v3387_v31 = vpop.eup %2206  ;;  %vm1150_vm12 = vweird.f32 %v3305_v14  ;;  %v984_v0 = vmul.f32 %v3372_v58, %v3300_v10  ;;  %v1570_v19 = vadd.f32 %v3099_v54, %v1502_v62  ;;  %645 = vadd.xlane.f32.xlu1 %v644_v63  ;;  %v1312_v50 = vsel %vm3397_vm11, %v3273_v59, %v3366_v56  ;;  %v32_v56 = vld [vmem:[%s4771_s0 + $0x78] sm:$0xff] }
 0x13d   :  { %v824_v11 = vmul.f32 %v3387_v31, %v3302_v48  ;;  %v1619_v18 = vadd.f32 %v3099_v54, %v1551_v20  ;;  %v3416_v3 = vsub.f32 %v2750_v47, %v306_v13  ;;  %v1148_v5 = vmul.f32 %v3305_v14, %v1147_v60  ;;  %vm3443_vm1 = vmor %vm1149_vm9, %vm1150_vm12 }
 0x13e   :  { %v985_v46 = vmul.f32 %v3372_v58, %v984_v0  ;;  %vm989_vm13 = vweird.f32 %v3300_v10  ;;  %vm990_vm14 = vweird.f32 %v3372_v58  ;;  %2105 = vmatmul.msk.f32.gmra.mxu0 %vm81_vm0, %v1570_v19  ;;  %2208 = vrsqrt.f32 %v3383_v37 }
 0x13f   :  { %v825_v59 = vmul.f32 %v3387_v31, %v824_v11  ;;  %vm829_vm15 = vweird.f32 %v3302_v48  ;;  %2154 = vmatmul.msk.f32.gmra.mxu3 %vm81_vm0, %v1619_v18  ;;  %v3428_v47 = vsub.f32 %v2757_v38, %v290_v57  ;;  %v271_v55 = vsel %vm81_vm0, %v80_v49, 0.0  ;;  %vm3505_vm6 = vmor %vm989_vm13, %vm990_vm14  ;;  %v2304_v11 = vld [vmem:[%s4771_s0 + $0xd0] sm:$0xff] }
 0x140   :  { %v1435_v43 = vmul.f32 %v822_v28, %v2687_v24  ;;  %v986_v15 = vmul.f32 0.5, %v985_v46  ;;  %272 = vadd.xlane.f32.xlu0 %v271_v55  ;;  %v1451_v45 = vmul.f32 %v982_v35, %v2683_v22  ;;  %v1467_v61 = vmul.f32 %v1142_v25, %v2680_v21  ;;  %v48_v55 = vld [vmem:[%s4771_s0 + $0xf8] sm:$0xff] }
 0x141   :  { %v323_v23 = vmul.f32 %v2613_v41, %v210_v8  ;;  %v826_v32 = vmul.f32 0.5, %v825_v59  ;;  %v434_v27 = vmul.f32 %v3416_v3, %v3416_v3  ;;  %v339_v38 = vmul.f32 %v2613_v41, %v258_v36  ;;  %v535_v2 = vpop.xlane.xlu1 %534 }
 0x142   :  { %v1503_v13 = vmul.f32 %v3082_v9, %v1435_v43  ;;  %v987_v21 = vsub.f32 1.5, %v986_v15  ;;  %vm830_vm2 = vweird.f32 %v3387_v31  ;;  %v1519_v22 = vmul.f32 %v3082_v9, %v1451_v45  ;;  %v114_v17 = vpop.xlane.xlu2 %113  ;;  %v487_v42 = vpop.xlane.xlu0 %486 }
 0x143   :  { %v1535_v28 = vmul.f32 %v3082_v9, %v1467_v61  ;;  %v1152_v53 = vsel %vm3443_vm1, %v3305_v14, %v1148_v5  ;;  %v827_v8 = vsub.f32 1.5, %v826_v32  ;;  %vm1159_vm3 = vweird.f32 %v3383_v37  ;;  %vm3492_vm5 = vmor %vm829_vm15, %vm830_vm2 }
 0x144   :  { %v1571_v40 = vadd.f32 %v3099_v54, %v1503_v13  ;;  %v548_v25 = vsel %vm81_vm0, %v434_v27, 0.0  ;;  %v3459_v62 = vpop.eup %2208  ;;  %v1587_v20 = vadd.f32 %v3099_v54, %v1519_v22  ;;  %v3464_v44 = vsub.f32 %v2771_v30, %v323_v23 }
 0x145   :  { %v1603_v36 = vadd.f32 %v3099_v54, %v1535_v28  ;;  %549 = vadd.xlane.f32.xlu2 %v548_v25  ;;  %v418_v14 = vmul.f32 %v3428_v47, %v3428_v47  ;;  %v828_v60 = vmul.f32 %v3387_v31, %v827_v8  ;;  %v1154_v63 = vmul.f32 %v3459_v62, %v3383_v37 }
 0x146   :  { %v3472_v57 = vsub.f32 %v2778_v4, %v339_v38  ;;  %v717_v35 = vmul.f32 %v3370_v6, %v2613_v41  ;;  %v988_v34 = vmul.f32 %v3372_v58, %v987_v21  ;;  %2106 = vmatmul.msk.f32.gmra.mxu0 %vm81_vm0, %v1571_v40  ;;  %2122 = vmatmul.msk.f32.gmra.mxu1 %vm81_vm0, %v1587_v20  ;;  %v127_v0 = vsel %vm81_vm0, %v32_v56, 0.0 }
 0x147   :  { %v500_v30 = vsel %vm81_vm0, %v418_v14, 0.0  ;;  %v1468_v19 = vmul.f32 %v1152_v53, %v2704_v39  ;;  %v1155_v49 = vmul.f32 %v3459_v62, %v1154_v63  ;;  %vm1160_vm4 = vweird.f32 %v3459_v62  ;;  %2138 = vmatmul.msk.f32.gmra.mxu2 %vm81_vm0, %v1603_v36 }
 0x148   :  { %501 = vadd.xlane.f32.xlu1 %v500_v30  ;;  %v3485_v4 = vadd.f32 1e-05, %v717_v35  ;;  %v1484_v6 = vmul.f32 %v1312_v50, %v2699_v51  ;;  %128 = vadd.xlane.f32.xlu0 %v127_v0  ;;  %v685_v18 = vmul.f32 %v535_v2, %v2613_v41  ;;  %v451_v5 = vmul.f32 %v3464_v44, %v3464_v44  ;;  %vm3544_vm7 = vmor %vm1159_vm3, %vm1160_vm4 }
 0x149   :  { %v1536_v39 = vmul.f32 %v3082_v9, %v1468_v19  ;;  %v291_v46 = vmul.f32 %v2613_v41, %v114_v17  ;;  %v832_v48 = vsel %vm3492_vm5, %v3387_v31, %v828_v60  ;;  %v1156_v50 = vmul.f32 0.5, %v1155_v49  ;;  %v586_v43 = vpop.xlane.xlu1 %585  ;;  %v2306_v17 = vld [vmem:[%s4771_s0 + $0x158] sm:$0xff] }
 0x14a   :  { %2210 = vrsqrt.f32 %v3485_v4  ;;  %v1552_v59 = vmul.f32 %v3082_v9, %v1484_v6  ;;  %v992_v10 = vsel %vm3505_vm6, %v3372_v58, %v988_v34  ;;  %v3521_v45 = vadd.f32 1e-05, %v685_v18  ;;  %v634_v61 = vpop.xlane.xlu2 %633  ;;  %v162_v23 = vpop.xlane.xlu0 %161 }
 0x14b   :  { %v1604_v15 = vadd.f32 %v3099_v54, %v1536_v39  ;;  %v599_v31 = vsel %vm81_vm0, %v451_v5, 0.0  ;;  %v1157_v32 = vsub.f32 1.5, %v1156_v50  ;;  %v3526_v27 = vsub.f32 %v2800_v26, %v291_v46 }
 0x14c   :  { %v1620_v13 = vadd.f32 %v3099_v54, %v1552_v59  ;;  %v669_v38 = vmul.f32 %v487_v42, %v2613_v41  ;;  %2212 = vrsqrt.f32 %v3521_v45  ;;  %v175_v58 = vsel %vm81_vm0, %v48_v55, 0.0 }
 0x14d   :  { %600 = vadd.xlane.f32.xlu2 %v599_v31  ;;  %v467_v2 = vmul.f32 %v3472_v57, %v3472_v57  ;;  %v1436_v24 = vmul.f32 %v832_v48, %v2727_v16  ;;  %v1158_v21 = vmul.f32 %v3459_v62, %v1157_v32  ;;  %v1452_v26 = vmul.f32 %v992_v10, %v2721_v12 }
 0x14e   :  { %2155 = vmatmul.msk.f32.gmra.mxu3 %vm81_vm0, %v1620_v13  ;;  %v3536_v22 = vadd.f32 1e-05, %v669_v38  ;;  %v718_v28 = vmul.f32 %v634_v61, %v2613_v41  ;;  %v702_v53 = vmul.f32 %v586_v43, %v2613_v41  ;;  %v419_v40 = vmul.f32 %v3526_v27, %v3526_v27 }
 0x14f   :  { %v647_v16 = vsel %vm81_vm0, %v467_v2, 0.0  ;;  %v1504_v42 = vmul.f32 %v3082_v9, %v1436_v24  ;;  %v1162_v12 = vsel %vm3544_vm7, %v3459_v62, %v1158_v21  ;;  %2139 = vmatmul.msk.f32.gmra.mxu2 %vm81_vm0, %v1604_v15  ;;  %v1520_v37 = vmul.f32 %v3082_v9, %v1452_v26  ;;  %v2305_v2 = vld [vmem:[%s4771_s0 + $0x1d8] sm:$0xff] }
 0x150   :  { %v3551_v8 = vpop.eup %2210  ;;  %176 = vadd.xlane.f32.xlu1 %v175_v58  ;;  %2214 = vrsqrt.f32 %v3536_v22  ;;  %648 = vadd.xlane.f32.xlu0 %v647_v16  ;;  %v3564_v20 = vadd.f32 1e-05, %v718_v28  ;;  %v3567_v36 = vadd.f32 1e-05, %v702_v53  ;;  %v307_v14 = vmul.f32 %v2613_v41, %v162_v23 }
 0x151   :  { %v1314_v25 = vmul.f32 %v3551_v8, %v3485_v4  ;;  %v1572_v56 = vadd.f32 %v3099_v54, %v1504_v42  ;;  %v1588_v62 = vadd.f32 %v3099_v54, %v1520_v37  ;;  %v261_v60 = vpop.xlane.xlu1 %260  ;;  %v1469_v34 = vmul.f32 %v1162_v12, %v2743_v33 }
 0x152   :  { %v3570_v63 = vpop.eup %2212  ;;  %2216 = vrsqrt.f32 %v3564_v20  ;;  %v490_v30 = vpop.xlane.xlu2 %489  ;;  %vm1319_vm8 = vweird.f32 %v3485_v4  ;;  %v503_v49 = vsel %vm81_vm0, %v419_v40, 0.0  ;;  %v3585_v39 = vsub.f32 %v2304_v11, %v307_v14 }
 0x153   :  { %v1315_v35 = vmul.f32 %v3551_v8, %v1314_v25  ;;  %2107 = vmatmul.msk.f32.gmra.mxu0 %vm81_vm0, %v1572_v56  ;;  %v213_v0 = vpop.xlane.xlu0 %212  ;;  %v994_v19 = vmul.f32 %v3570_v63, %v3521_v45  ;;  %2123 = vmatmul.msk.f32.gmra.mxu1 %vm81_vm0, %v1588_v62  ;;  %2218 = vrsqrt.f32 %v3567_v36  ;;  %v1537_v33 = vmul.f32 %v3082_v9, %v1469_v34 }
 0x154   :  { %v670_v18 = vmul.f32 %v490_v30, %v2613_v41  ;;  %vm1320_vm9 = vweird.f32 %v3551_v8  ;;  %vm999_vm10 = vweird.f32 %v3521_v45  ;;  %v340_v51 = vmul.f32 %v2613_v41, %v261_v60 }
 0x155   :  { %v1316_v6 = vmul.f32 0.5, %v1315_v35  ;;  %v995_v46 = vmul.f32 %v3570_v63, %v994_v19  ;;  %v1605_v59 = vadd.f32 %v3099_v54, %v1537_v33  ;;  %v324_v55 = vmul.f32 %v2613_v41, %v213_v0  ;;  %vm3618_vm15 = vmor %vm1319_vm8, %vm1320_vm9 }
 0x156   :  { %v3589_v5 = vpop.eup %2214  ;;  %vm839_vm11 = vweird.f32 %v3536_v22  ;;  %v3600_v10 = vadd.f32 1e-05, %v670_v18  ;;  %v435_v15 = vmul.f32 %v3585_v39, %v3585_v39  ;;  %vm1000_vm12 = vweird.f32 %v3570_v63 }
 0x157   :  { %v1317_v48 = vsub.f32 1.5, %v1316_v6  ;;  %v834_v50 = vmul.f32 %v3589_v5, %v3536_v22  ;;  %v996_v43 = vmul.f32 0.5, %v995_v46  ;;  %vm840_vm13 = vweird.f32 %v3589_v5  ;;  %2140 = vmatmul.msk.f32.gmra.mxu2 %vm81_vm0, %v1605_v59  ;;  %vm3652_vm3 = vmor %vm999_vm10, %vm1000_vm12 }
 0x158   :  { %504 = vadd.xlane.f32.xlu1 %v503_v49  ;;  %v3604_v31 = vpop.eup %2216  ;;  %vm1329_vm14 = vweird.f32 %v3564_v20  ;;  %2220 = vrsqrt.f32 %v3600_v10  ;;  %v3628_v24 = vsub.f32 %v2305_v2, %v340_v51  ;;  %v3638_v16 = vsub.f32 %v2306_v17, %v324_v55  ;;  %vm3671_vm5 = vmor %vm839_vm11, %vm840_vm13 }
 0x159   :  { %v1318_v61 = vmul.f32 %v3551_v8, %v1317_v48  ;;  %v835_v23 = vmul.f32 %v3589_v5, %v834_v50  ;;  %v3612_v32 = vpop.eup %2218  ;;  %v997_v38 = vsub.f32 1.5, %v996_v43  ;;  %v1324_v58 = vmul.f32 %v3604_v31, %v3564_v20  ;;  %v117_v21 = vpop.xlane.xlu1 %116  ;;  %v2308_v48 = vld [vmem:[%s4771_s0 + $0x58] sm:$0xff] }
 0x15a   :  { %v1164_v28 = vmul.f32 %v3612_v32, %v3567_v36  ;;  %v165_v42 = vpop.xlane.xlu2 %164  ;;  %vm1330_vm1 = vweird.f32 %v3604_v31  ;;  %vm1169_vm2 = vweird.f32 %v3567_v36  ;;  %vm1170_vm4 = vweird.f32 %v3612_v32 }
 0x15b   :  { %v1322_v4 = vsel %vm3618_vm15, %v3551_v8, %v1318_v61  ;;  %v836_v26 = vmul.f32 0.5, %v835_v23  ;;  %v538_v53 = vpop.xlane.xlu0 %537  ;;  %v998_v12 = vmul.f32 %v3570_v63, %v997_v38  ;;  %v1325_v37 = vmul.f32 %v3604_v31, %v1324_v58  ;;  %v4850_v38 = vld [vmem:[#allocation2_spill] sm:$0xff]  ;;  %vm3705_vm6 = vmor %vm1329_vm14, %vm1330_vm1 }
 0x15c   :  { %v551_v8 = vsel %vm81_vm0, %v435_v15, 0.0  ;;  %v1165_v25 = vmul.f32 %v3612_v32, %v1164_v28  ;;  %v1485_v56 = vmul.f32 %v1322_v4, %v2762_v52  ;;  %v308_v62 = vmul.f32 %v2613_v41, %v165_v42  ;;  %vm3722_vm8 = vmor %vm1169_vm2, %vm1170_vm4 }
 0x15d   :  { %v837_v40 = vsub.f32 1.5, %v836_v26  ;;  %552 = vadd.xlane.f32.xlu2 %v551_v8  ;;  %v1326_v60 = vmul.f32 0.5, %v1325_v37  ;;  %v292_v35 = vmul.f32 %v2613_v41, %v117_v21  ;;  %v468_v34 = vmul.f32 %v3628_v24, %v3628_v24 }
 0x15e   :  { %v1002_v52 = vsel %vm3652_vm3, %v3570_v63, %v998_v12  ;;  %v1166_v0 = vmul.f32 0.5, %v1165_v25  ;;  %v1553_v45 = vmul.f32 %v3082_v9, %v1485_v56  ;;  %v3665_v19 = vpop.eup %2220  ;;  %v2307_v63 = vld [vmem:[%s4771_s0 + $0xd8] sm:$0xff]  ;;  %v452_v18 = vmul.f32 %v3638_v16, %v3638_v16 }
 0x15f   :  { %v838_v30 = vmul.f32 %v3589_v5, %v837_v40  ;;  %v1327_v6 = vsub.f32 1.5, %v1326_v60  ;;  %v3678_v11 = vsub.f32 %v2307_v63, %v308_v62  ;;  %v650_v33 = vsel %vm81_vm0, %v468_v34, 0.0  ;;  %v4855_v34 = vld [vmem:[#allocation3_spill] sm:$0xff] }
 0x160   :  { %v1167_v46 = vsub.f32 1.5, %v1166_v0  ;;  %v844_v51 = vmul.f32 %v3665_v19, %v3600_v10  ;;  %v3691_v50 = vsub.f32 %v2308_v48, %v292_v35  ;;  %651 = vadd.xlane.f32.xlu1 %v650_v33  ;;  %v1621_v55 = vadd.f32 %v3099_v54, %v1553_v45 }
 0x161   :  { %v842_v22 = vsel %vm3671_vm5, %v3589_v5, %v838_v30  ;;  %v1328_v59 = vmul.f32 %v3604_v31, %v1327_v6  ;;  %v602_v43 = vsel %vm81_vm0, %v452_v18, 0.0  ;;  %v686_v15 = vmul.f32 %v538_v53, %v2613_v41  ;;  %v637_v5 = vpop.xlane.xlu1 %636  ;;  %v4856_v30 = vld [vmem:[#allocation4_spill] sm:$0xff] }
 0x162   :  { %v1168_v61 = vmul.f32 %v3612_v32, %v1167_v46  ;;  %v845_v23 = vmul.f32 %v3665_v19, %v844_v51  ;;  %603 = vadd.xlane.f32.xlu0 %v602_v43  ;;  %v1437_v13 = vmul.f32 %v842_v22, %v2791_v7  ;;  %v1453_v58 = vmul.f32 %v1002_v52, %v4850_v38  ;;  %v216_v2 = vpop.xlane.xlu2 %215 }
 0x163   :  { %v589_v21 = vpop.xlane.xlu0 %588  ;;  %vm850_vm7 = vweird.f32 %v3665_v19  ;;  %2156 = vmatmul.msk.f32.gmra.mxu3 %vm81_vm0, %v1621_v55  ;;  %v3711_v26 = vadd.f32 1e-05, %v686_v15  ;;  %v325_v7 = vmul.f32 %v2613_v41, %v216_v2  ;;  %v719_v28 = vmul.f32 %v637_v5, %v2613_v41 }
 0x164   :  { %v1332_v17 = vsel %vm3705_vm6, %v3604_v31, %v1328_v59  ;;  %v846_v42 = vmul.f32 0.5, %v845_v23  ;;  %v1505_v53 = vmul.f32 %v3082_v9, %v1437_v13  ;;  %v1521_v12 = vmul.f32 %v3082_v9, %v1453_v58  ;;  %v2309_v31 = vld [vmem:[%s4771_s0 + $0x160] sm:$0xff]  ;;  %v4859_v58 = vld [vmem:[#allocation5_spill] sm:$0xff] }
 0x165   :  { %v1172_v37 = vsel %vm3722_vm8, %v3612_v32, %v1168_v61  ;;  %2222 = vrsqrt.f32 %v3711_v26  ;;  %v3735_v36 = vsub.f32 %v2309_v31, %v325_v7  ;;  %v3737_v8 = vadd.f32 1e-05, %v719_v28  ;;  %v2310_v7 = vld [vmem:[%s4771_s0 + $0x1e0] sm:$0xff] }
 0x166   :  { %v847_v40 = vsub.f32 1.5, %v846_v42  ;;  %v1573_v25 = vadd.f32 %v3099_v54, %v1505_v53  ;;  %v1589_v56 = vadd.f32 %v3099_v54, %v1521_v12  ;;  %v420_v62 = vmul.f32 %v3691_v50, %v3691_v50 }
 0x167   :  { %vm849_vm9 = vweird.f32 %v3600_v10  ;;  %2224 = vrsqrt.f32 %v3737_v8  ;;  %v436_v32 = vmul.f32 %v3678_v11, %v3678_v11  ;;  %v703_v14 = vmul.f32 %v589_v21, %v2613_v41  ;;  %v2311_v10 = vld [vmem:[%s4771_s0 + $0xe0] sm:$0xff] }
 0x168   :  { %v848_v60 = vmul.f32 %v3665_v19, %v847_v40  ;;  %2108 = vmatmul.msk.f32.gmra.mxu0 %vm81_vm0, %v1573_v25  ;;  %2124 = vmatmul.msk.f32.gmra.mxu1 %vm81_vm0, %v1589_v56  ;;  %v506_v35 = vsel %vm81_vm0, %v420_v62, 0.0  ;;  %v1470_v52 = vmul.f32 %v1172_v37, %v4855_v34  ;;  %v1486_v0 = vmul.f32 %v1332_v17, %v4856_v30  ;;  %vm3756_vm10 = vmor %vm849_vm9, %vm850_vm7 }
 0x169   :  { %507 = vadd.xlane.f32.xlu2 %v506_v35  ;;  %v554_v45 = vsel %vm81_vm0, %v436_v32, 0.0  ;;  %v3761_v49 = vadd.f32 1e-05, %v703_v14  ;;  %v493_v6 = vpop.xlane.xlu1 %492  ;;  %v453_v63 = vmul.f32 %v3735_v36, %v3735_v36  ;;  %vm1009_vm11 = vweird.f32 %v3711_v26 }
 0x16a   :  { %v852_v33 = vsel %vm3756_vm10, %v3665_v19, %v848_v60  ;;  %555 = vadd.xlane.f32.xlu0 %v554_v45  ;;  %v1538_v18 = vmul.f32 %v3082_v9, %v1470_v52  ;;  %v1554_v22 = vmul.f32 %v3082_v9, %v1486_v0  ;;  %v541_v46 = vpop.xlane.xlu2 %540  ;;  %v671_v51 = vmul.f32 %v493_v6, %v2613_v41 }
 0x16b   :  { %v264_v48 = vpop.xlane.xlu0 %263  ;;  %v3771_v59 = vpop.eup %2222  ;;  %2226 = vrsqrt.f32 %v3761_v49  ;;  %v687_v55 = vmul.f32 %v541_v46, %v2613_v41  ;;  %v605_v43 = vsel %vm81_vm0, %v453_v63, 0.0  ;;  %v1438_v2 = vmul.f32 %v852_v33, %v4859_v58 }
 0x16c   :  { %v1004_v19 = vmul.f32 %v3771_v59, %v3711_v26  ;;  %v1606_v15 = vadd.f32 %v3099_v54, %v1538_v18  ;;  %v1622_v5 = vadd.f32 %v3099_v54, %v1554_v22  ;;  %606 = vadd.xlane.f32.xlu1 %v605_v43  ;;  %v3784_v13 = vadd.f32 1e-05, %v671_v51  ;;  %v2312_v43 = vld [vmem:[%s4771_s0 + $0x60] sm:$0xff] }
 0x16d   :  { %v3780_v61 = vpop.eup %2224  ;;  %v3782_v23 = vadd.f32 1e-05, %v687_v55  ;;  %v341_v38 = vmul.f32 %v2613_v41, %v264_v48  ;;  %v1506_v42 = vmul.f32 %v3082_v9, %v1438_v2  ;;  %vm1339_vm12 = vweird.f32 %v3737_v8 }
 0x16e   :  { %v1005_v21 = vmul.f32 %v3771_v59, %v1004_v19  ;;  %v1334_v4 = vmul.f32 %v3780_v61, %v3737_v8  ;;  %2141 = vmatmul.msk.f32.gmra.mxu2 %vm81_vm0, %v1606_v15  ;;  %2157 = vmatmul.msk.f32.gmra.mxu3 %vm81_vm0, %v1622_v5  ;;  %vm1010_vm13 = vweird.f32 %v3771_v59  ;;  %vm1340_vm14 = vweird.f32 %v3780_v61  ;;  %v4864_v15 = vld [vmem:[#allocation6_spill] sm:$0xff] }
 0x16f   :  { %2228 = vrsqrt.f32 %v3782_v23  ;;  %v3797_v28 = vsub.f32 %v2310_v7, %v341_v38  ;;  %v1574_v9 = vadd.f32 %v3099_v54, %v1506_v42  ;;  %vm3824_vm15 = vmor %vm1009_vm11, %vm1010_vm13  ;;  %vm1179_vm1 = vweird.f32 %v3761_v49 }
 0x170   :  { %v1006_v17 = vmul.f32 0.5, %v1005_v21  ;;  %v1335_v20 = vmul.f32 %v3780_v61, %v1334_v4  ;;  %2230 = vrsqrt.f32 %v3784_v13  ;;  %vm1019_vm2 = vweird.f32 %v3782_v23  ;;  %vm3851_vm3 = vmor %vm1339_vm12, %vm1340_vm14 }
 0x171   :  { %v3802_v53 = vpop.eup %2226  ;;  %v168_v12 = vpop.xlane.xlu1 %167  ;;  %v469_v37 = vmul.f32 %v3797_v28, %v3797_v28  ;;  %2109 = vmatmul.msk.f32.gmra.mxu0 %vm81_vm0, %v1574_v9  ;;  %vm859_vm8 = vweird.f32 %v3784_v13 }
 0x172   :  { %v1007_v31 = vsub.f32 1.5, %v1006_v17  ;;  %v1336_v40 = vmul.f32 0.5, %v1335_v20  ;;  %v1174_v25 = vmul.f32 %v3802_v53, %v3761_v49  ;;  %v592_v56 = vpop.xlane.xlu2 %591  ;;  %v309_v14 = vmul.f32 %v2613_v41, %v168_v12  ;;  %v4865_v17 = vld [vmem:[#allocation8_spill] sm:$0xff] }
 0x173   :  { %v120_v62 = vpop.xlane.xlu0 %119  ;;  %v704_v32 = vmul.f32 %v592_v56, %v2613_v41  ;;  %v653_v60 = vsel %vm81_vm0, %v469_v37, 0.0  ;;  %vm1180_vm4 = vweird.f32 %v3802_v53  ;;  %v3888_v37 = vld [vmem:[%s4772_s1] ss:$0 sm:$0xff] }
 0x174   :  { %v1008_v35 = vmul.f32 %v3771_v59, %v1007_v31  ;;  %v1337_v34 = vsub.f32 1.5, %v1336_v40  ;;  %v1175_v52 = vmul.f32 %v3802_v53, %v1174_v25  ;;  %654 = vadd.xlane.f32.xlu2 %v653_v60  ;;  %v3835_v45 = vsub.f32 %v2311_v10, %v309_v14  ;;  %vm3881_vm7 = vmor %vm1179_vm1, %vm1180_vm4 }
 0x175   :  { %v3818_v30 = vpop.eup %2228  ;;  %v3830_v0 = vadd.f32 1e-05, %v704_v32  ;;  %v293_v6 = vmul.f32 %v2613_v41, %v120_v62  ;;  %v2314_v62 = vld [vmem:[%s4771_s0 + $0x168] sm:$0xff] }
 0x176   :  { %v3838_v63 = vpop.eup %2230  ;;  %v1012_v26 = vsel %vm3824_vm15, %v3771_v59, %v1008_v35  ;;  %v1338_v33 = vmul.f32 %v3780_v61, %v1337_v34  ;;  %v1176_v18 = vmul.f32 0.5, %v1175_v52  ;;  %v1014_v22 = vmul.f32 %v3818_v30, %v3782_v23  ;;  %v3908_v35 = vld [vmem:[%s4773_s2] ss:$0 sm:$0xff]  ;;  %v2316_v34 = vld [vmem:[%s4771_s0 + $0x1e8] sm:$0xff] }
 0x177   :  { %vm1020_vm5 = vweird.f32 %v3818_v30  ;;  %v854_v51 = vmul.f32 %v3838_v63, %v3784_v13  ;;  %2232 = vrsqrt.f32 %v3830_v0  ;;  %vm860_vm6 = vweird.f32 %v3838_v63  ;;  %v4870_v13 = vld [vmem:[#allocation7_spill] sm:$0xff] }
 0x178   :  { %v1342_v48 = vsel %vm3851_vm3, %v3780_v61, %v1338_v33  ;;  %v1177_v59 = vsub.f32 1.5, %v1176_v18  ;;  %v1015_v8 = vmul.f32 %v3818_v30, %v1014_v22  ;;  %v3869_v19 = vsub.f32 %v2312_v43, %v293_v6  ;;  %vm3926_vm9 = vmor %vm1019_vm2, %vm1020_vm5 }
 0x179   :  { %v855_v55 = vmul.f32 %v3838_v63, %v854_v51  ;;  %v1454_v5 = vmul.f32 %v1012_v26, %v4864_v15  ;;  %v219_v38 = vpop.xlane.xlu1 %218  ;;  %v437_v58 = vmul.f32 %v3835_v45, %v3835_v45  ;;  %v1487_v20 = vmul.f32 %v1342_v48, %v4865_v17  ;;  %vm3938_vm10 = vmor %vm859_vm8, %vm860_vm6 }
 0x17a   :  { %v1178_v61 = vmul.f32 %v3802_v53, %v1177_v59  ;;  %v1016_v2 = vmul.f32 0.5, %v1015_v8  ;;  %v267_v21 = vpop.xlane.xlu2 %266  ;;  %v326_v4 = vmul.f32 %v2613_v41, %v219_v38  ;;  %v421_v32 = vmul.f32 %v3869_v19, %v3869_v19 }
 0x17b   :  { %v640_v7 = vpop.xlane.xlu0 %639  ;;  %v856_v12 = vmul.f32 0.5, %v855_v55  ;;  %v1522_v31 = vmul.f32 %v3888_v37, %v1454_v5  ;;  %v342_v40 = vmul.f32 %v2613_v41, %v267_v21  ;;  %v557_v25 = vsel %vm81_vm0, %v437_v58, 0.0 }
 0x17c   :  { %v1182_v49 = vsel %vm3881_vm7, %v3802_v53, %v1178_v61  ;;  %v1017_v56 = vsub.f32 1.5, %v1016_v2  ;;  %v3899_v9 = vsub.f32 %v2314_v62, %v326_v4  ;;  %558 = vadd.xlane.f32.xlu1 %v557_v25  ;;  %v720_v54 = vmul.f32 %v640_v7, %v2613_v41 }
 0x17d   :  { %v3903_v14 = vpop.eup %2232  ;;  %v857_v60 = vsub.f32 1.5, %v856_v12  ;;  %v1590_v53 = vadd.f32 %v3908_v35, %v1522_v31  ;;  %v3914_v52 = vsub.f32 %v2316_v34, %v342_v40  ;;  %v509_v26 = vsel %vm81_vm0, %v421_v32, 0.0  ;;  %v4873_v12 = vld [vmem:[#allocation9_spill] sm:$0xff]  ;;  %v4874_v40 = vld [vmem:[#allocation10_spill] sm:$0xff] }
 0x17e   :  { %v1018_v10 = vmul.f32 %v3818_v30, %v1017_v56  ;;  %v1184_v6 = vmul.f32 %v3903_v14, %v3830_v0  ;;  %510 = vadd.xlane.f32.xlu0 %v509_v26  ;;  %v3932_v22 = vadd.f32 1e-05, %v720_v54  ;;  %v1471_v46 = vmul.f32 %v1182_v49, %v4870_v13  ;;  %v2317_v49 = vld [vmem:[%s4771_s0 + $0x68] sm:$0xff] }
 0x17f   :  { %v858_v18 = vmul.f32 %v3838_v63, %v857_v60  ;;  %2125 = vmatmul.msk.f32.gmra.mxu1 %vm81_vm0, %v1590_v53  ;;  %v1555_v51 = vmul.f32 %v3888_v37, %v1487_v20  ;;  %vm1190_vm11 = vweird.f32 %v3903_v14  ;;  %v454_v59 = vmul.f32 %v3899_v9, %v3899_v9  ;;  %v4875_v13 = vld [vmem:[#allocation11_spill] sm:$0xff] }
 0x180   :  { %v1185_v23 = vmul.f32 %v3903_v14, %v1184_v6  ;;  %v470_v8 = vmul.f32 %v3914_v52, %v3914_v52  ;;  %v1022_v55 = vsel %vm3926_vm9, %v3818_v30, %v1018_v10  ;;  %2234 = vrsqrt.f32 %v3932_v22 }
 0x181   :  { %v862_v43 = vsel %vm3938_vm10, %v3838_v63, %v858_v18  ;;  %v1539_v15 = vmul.f32 %v3888_v37, %v1471_v46  ;;  %v544_v5 = vpop.xlane.xlu1 %543  ;;  %v1623_v58 = vadd.f32 %v3908_v35, %v1555_v51  ;;  %v608_v21 = vsel %vm81_vm0, %v454_v59, 0.0 }
 0x182   :  { %v1186_v38 = vmul.f32 0.5, %v1185_v23  ;;  %v123_v61 = vpop.xlane.xlu2 %122  ;;  %v688_v2 = vmul.f32 %v544_v5, %v2613_v41  ;;  %609 = vadd.xlane.f32.xlu2 %v608_v21  ;;  %v656_v63 = vsel %vm81_vm0, %v470_v8, 0.0  ;;  %v1439_v31 = vmul.f32 %v862_v43, %v4873_v12 }
 0x183   :  { %v496_v4 = vpop.xlane.xlu0 %495  ;;  %v1607_v30 = vadd.f32 %v3908_v35, %v1539_v15  ;;  %v294_v7 = vmul.f32 %v2613_v41, %v123_v61  ;;  %2158 = vmatmul.msk.f32.gmra.mxu3 %vm81_vm0, %v1623_v58  ;;  %v1455_v25 = vmul.f32 %v1022_v55, %v4874_v40  ;;  %vm1189_vm12 = vweird.f32 %v3830_v0  ;;  %v2318_v61 = vld [vmem:[%s4771_s0 + $0xe8] sm:$0xff] }
 0x184   :  { %v672_v17 = vmul.f32 %v496_v4, %v2613_v41  ;;  %v1187_v20 = vsub.f32 1.5, %v1186_v38  ;;  %v3964_v42 = vadd.f32 1e-05, %v688_v2  ;;  %v1507_v60 = vmul.f32 %v3888_v37, %v1439_v31  ;;  %vm1191_vm13 = vmor %vm1189_vm12, %vm1190_vm11 }
 0x185   :  { %2142 = vmatmul.msk.f32.gmra.mxu2 %vm81_vm0, %v1607_v30  ;;  %v3972_v56 = vsub.f32 %v2317_v49, %v294_v7  ;;  %v1523_v34 = vmul.f32 %v3888_v37, %v1455_v25  ;;  %vm1349_vm15 = vweird.f32 %v3932_v22  ;;  %vm2035_vm8 = vcmask 195584  }
 0x186   :  { %v3974_v62 = vadd.f32 1e-05, %v672_v17  ;;  %v1188_v32 = vmul.f32 %v3903_v14, %v1187_v20  ;;  %2236 = vrsqrt.f32 %v3964_v42  ;;  %v2235_v53 = vpop.eup %2234  ;;  %657 = vadd.xlane.f32.xlu0 %v656_v63  ;;  %v1575_v6 = vadd.f32 %v3908_v35, %v1507_v60 }
 0x187   :  { %v422_v54 = vmul.f32 %v3972_v56, %v3972_v56  ;;  %v1344_v0 = vmul.f32 %v2235_v53, %v3932_v22  ;;  %v1591_v26 = vadd.f32 %v3908_v35, %v1523_v34  ;;  %vm1350_vm14 = vweird.f32 %v2235_v53 }
 0x188   :  { %2238 = vrsqrt.f32 %v3974_v62  ;;  %v1192_v10 = vsel %vm1191_vm13, %v3903_v14, %v1188_v32  ;;  %2110 = vmatmul.msk.f32.gmra.mxu0 %vm81_vm0, %v1575_v6  ;;  %vm1351_vm1 = vmor %vm1349_vm15, %vm1350_vm14  ;;  %vm1029_vm3 = vweird.f32 %v3964_v42  ;;  %vm869_vm6 = vweird.f32 %v3974_v62 }
 0x189   :  { %v595_v33 = vpop.xlane.xlu1 %594  ;;  %v512_v18 = vsel %vm81_vm0, %v422_v54, 0.0  ;;  %v1472_v46 = vmul.f32 %v1192_v10, %v4875_v13  ;;  %v1345_v51 = vmul.f32 %v2235_v53, %v1344_v0  ;;  %2126 = vmatmul.msk.f32.gmra.mxu1 %vm81_vm0, %v1591_v26  ;;  %v4876_v0 = vld [vmem:[#allocation12_spill] sm:$0xff] }
 0x18a   :  { %v705_v48 = vmul.f32 %v595_v33, %v2613_v41  ;;  %513 = vadd.xlane.f32.xlu1 %v512_v18  ;;  %v643_v14 = vpop.xlane.xlu2 %642  ;;  %v2319_v13 = vld [vmem:[%s4771_s0 + $0x1f0] sm:$0xff] }
 0x18b   :  { %v171_v23 = vpop.xlane.xlu0 %170  ;;  %v1540_v8 = vmul.f32 %v3888_v37, %v1472_v46  ;;  %v1346_v43 = vmul.f32 0.5, %v1345_v51  ;;  %v721_v15 = vmul.f32 %v643_v14, %v2613_v41  ;;  %v2320_v51 = vld [vmem:[%s4771_s0 + $0x170] sm:$0xff] }
 0x18c   :  { %v310_v59 = vmul.f32 %v2613_v41, %v171_v23  ;;  %v3997_v55 = vpop.eup %2236  ;;  %v4000_v5 = vadd.f32 1e-05, %v705_v48  ;;  %v2322_v14 = vld [vmem:[%s4771_s0 + $0xf0] sm:$0xff] }
 0x18d   :  { %v1024_v58 = vmul.f32 %v3997_v55, %v3964_v42  ;;  %v1608_v21 = vadd.f32 %v3908_v35, %v1540_v8  ;;  %v1347_v4 = vsub.f32 1.5, %v1346_v43  ;;  %v4014_v7 = vadd.f32 1e-05, %v721_v15 }
 0x18e   :  { %v4002_v38 = vpop.eup %2238  ;;  %v4009_v2 = vsub.f32 %v2318_v61, %v310_v59  ;;  %2240 = vrsqrt.f32 %v4000_v5  ;;  %vm1030_vm2 = vweird.f32 %v3997_v55  ;;  %vm1199_vm9 = vweird.f32 %v4000_v5 }
 0x18f   :  { %v864_v30 = vmul.f32 %v4002_v38, %v3974_v62  ;;  %v1025_v63 = vmul.f32 %v3997_v55, %v1024_v58  ;;  %2143 = vmatmul.msk.f32.gmra.mxu2 %vm81_vm0, %v1608_v21  ;;  %v1348_v20 = vmul.f32 %v2235_v53, %v1347_v4  ;;  %2242 = vrsqrt.f32 %v4014_v7  ;;  %vm4050_vm5 = vmor %vm1029_vm3, %vm1030_vm2 }
 0x190   :  { %v438_v17 = vmul.f32 %v4009_v2, %v4009_v2  ;;  %vm870_vm4 = vweird.f32 %v4002_v38  ;;  %vm1359_vm12 = vweird.f32 %v4014_v7 }
 0x191   :  { %v865_v12 = vmul.f32 %v4002_v38, %v864_v30  ;;  %v1026_v31 = vmul.f32 0.5, %v1025_v63  ;;  %v270_v40 = vpop.xlane.xlu1 %269  ;;  %v1352_v49 = vsel %vm1351_vm1, %v2235_v53, %v1348_v20  ;;  %vm871_vm7 = vmor %vm869_vm6, %vm870_vm4 }
 0x192   :  { %v560_v25 = vsel %vm81_vm0, %v438_v17, 0.0  ;;  %v343_v60 = vmul.f32 %v2613_v41, %v270_v40  ;;  %v499_v10 = vpop.xlane.xlu2 %498  ;;  %v1488_v6 = vmul.f32 %v1352_v49, %v4876_v0  ;;  %v4879_v17 = vld [vmem:[#allocation14_spill] sm:$0xff]  ;;  %v4880_v40 = vld [vmem:[#allocation13_spill] sm:$0xff]  ;;  %v2321_v0 = vld [vmem:[%s4771_s0 + $0x70] sm:$0xff] }
 0x193   :  { %v866_v32 = vmul.f32 0.5, %v865_v12  ;;  %561 = vadd.xlane.f32.xlu2 %v560_v25  ;;  %v222_v34 = vpop.xlane.xlu0 %221  ;;  %v1027_v54 = vsub.f32 1.5, %v1026_v31  ;;  %v673_v53 = vmul.f32 %v499_v10, %v2613_v41 }
 0x194   :  { %v327_v22 = vmul.f32 %v2613_v41, %v222_v34  ;;  %v4032_v33 = vpop.eup %2240  ;;  %v4038_v46 = vsub.f32 %v2319_v13, %v343_v60  ;;  %v1556_v48 = vmul.f32 %v3888_v37, %v1488_v6 }
 0x195   :  { %v867_v26 = vsub.f32 1.5, %v866_v32  ;;  %v1028_v18 = vmul.f32 %v3997_v55, %v1027_v54  ;;  %v4046_v23 = vpop.eup %2242  ;;  %v1194_v8 = vmul.f32 %v4032_v33, %v4000_v5  ;;  %v4058_v43 = vadd.f32 1e-05, %v673_v53 }
 0x196   :  { %v4043_v42 = vsub.f32 %v2320_v51, %v327_v22  ;;  %v1354_v58 = vmul.f32 %v4046_v23, %v4014_v7  ;;  %v1624_v61 = vadd.f32 %v3908_v35, %v1556_v48  ;;  %v471_v30 = vmul.f32 %v4038_v46, %v4038_v46 }
 0x197   :  { %v868_v59 = vmul.f32 %v4002_v38, %v867_v26  ;;  %v1032_v15 = vsel %vm4050_vm5, %v3997_v55, %v1028_v18  ;;  %v1195_v21 = vmul.f32 %v4032_v33, %v1194_v8  ;;  %2244 = vrsqrt.f32 %v4058_v43 }
 0x198   :  { %v1355_v4 = vmul.f32 %v4046_v23, %v1354_v58  ;;  %2159 = vmatmul.msk.f32.gmra.mxu3 %vm81_vm0, %v1624_v61  ;;  %v455_v63 = vmul.f32 %v4043_v42, %v4043_v42  ;;  %vm1200_vm10 = vweird.f32 %v4032_v33  ;;  %v1456_v25 = vmul.f32 %v1032_v15, %v4880_v40 }
 0x199   :  { %v872_v62 = vsel %vm871_vm7, %v4002_v38, %v868_v59  ;;  %v126_v55 = vpop.xlane.xlu1 %125  ;;  %v1196_v38 = vmul.f32 0.5, %v1195_v21  ;;  %v659_v60 = vsel %vm81_vm0, %v471_v30, 0.0  ;;  %vm1360_vm11 = vweird.f32 %v4046_v23  ;;  %vm1201_vm13 = vmor %vm1199_vm9, %vm1200_vm10 }
 0x19a   :  { %v1440_v20 = vmul.f32 %v872_v62, %v4879_v17  ;;  %v295_v12 = vmul.f32 %v2613_v41, %v126_v55  ;;  %v1356_v49 = vmul.f32 0.5, %v1355_v4  ;;  %v174_v32 = vpop.xlane.xlu2 %173  ;;  %v611_v34 = vsel %vm81_vm0, %v455_v63, 0.0  ;;  %660 = vadd.xlane.f32.xlu1 %v659_v60  ;;  %vm1361_vm14 = vmor %vm1359_vm12, %vm1360_vm11  ;;  %v4881_v63 = vld [vmem:[#allocation16_spill] sm:$0xff] }
 0x19b   :  { %v547_v31 = vpop.xlane.xlu0 %546  ;;  %v1197_v10 = vsub.f32 1.5, %v1196_v38  ;;  %v311_v22 = vmul.f32 %v2613_v41, %v174_v32  ;;  %612 = vadd.xlane.f32.xlu0 %v611_v34  ;;  %v1524_v13 = vmul.f32 %v3888_v37, %v1456_v25  ;;  %vm879_vm1 = vweird.f32 %v4058_v43 }
 0x19c   :  { %v689_v54 = vmul.f32 %v547_v31, %v2613_v41  ;;  %v4089_v6 = vsub.f32 %v2321_v0, %v295_v12  ;;  %v1508_v26 = vmul.f32 %v3888_v37, %v1440_v20  ;;  %v1357_v53 = vsub.f32 1.5, %v1356_v49  ;;  %v4883_v0 = vld [vmem:[#allocation17_spill] sm:$0xff] }
 0x19d   :  { %v2245_v51 = vpop.eup %2244  ;;  %v1198_v48 = vmul.f32 %v4032_v33, %v1197_v10  ;;  %v4100_v59 = vsub.f32 %v2322_v14, %v311_v22  ;;  %v1592_v21 = vadd.f32 %v3908_v35, %v1524_v13 }
 0x19e   :  { %v4093_v18 = vadd.f32 1e-05, %v689_v54  ;;  %v1576_v8 = vadd.f32 %v3908_v35, %v1508_v26  ;;  %v423_v15 = vmul.f32 %v4089_v6, %v4089_v6  ;;  %v1358_v58 = vmul.f32 %v4046_v23, %v1357_v53 }
 0x19f   :  { %v874_v61 = vmul.f32 %v2245_v51, %v4058_v43  ;;  %v1202_v62 = vsel %vm1201_vm13, %v4032_v33, %v1198_v48  ;;  %v1891_v5 = vpop.f32.mrf.mxu1  ;;  %v439_v30 = vmul.f32 %v4100_v59, %v4100_v59  ;;  %2127 = vmatmul.msk.f32.gmra.mxu1 %vm81_vm0, %v1592_v21  ;;  %v4882_v33 = vld [vmem:[#allocation15_spill] sm:$0xff]  ;;  %vm880_vm15 = vweird.f32 %v2245_v51 }
 0x1a0   :  { %2246 = vrsqrt.f32 %v4093_v18  ;;  %2111 = vmatmul.msk.f32.gmra.mxu0 %vm81_vm0, %v1576_v8  ;;  %v515_v7 = vsel %vm81_vm0, %v423_v15, 0.0  ;;  %v1362_v4 = vsel %vm1361_vm14, %v4046_v23, %v1358_v58  ;;  %v1473_v17 = vmul.f32 %v1202_v62, %v4881_v63  ;;  %2052 = vst.msk [vmem:[%s4775_s4 + $0x80] sm:$0xff] %vm2035_vm8, %v1891_v5  ;;  %vm881_vm2 = vmor %vm879_vm1, %vm880_vm15  ;;  %v4884_v63 = vld [vmem:[#allocation18_spill] sm:$0xff] }
 0x1a1   :  { %v875_v55 = vmul.f32 %v2245_v51, %v874_v61  ;;  %516 = vadd.xlane.f32.xlu2 %v515_v7  ;;  %v1489_v20 = vmul.f32 %v1362_v4, %v4882_v33  ;;  %v563_v23 = vsel %vm81_vm0, %v439_v30, 0.0  ;;  %vm1039_vm4 = vweird.f32 %v4093_v18  ;;  %v2323_v61 = vld [vmem:[%s4771_s0 + $0x178] sm:$0xff] }
 0x1a2   :  { %v1541_v12 = vmul.f32 %v3888_v37, %v1473_v17 }
 0x1a3   :  { %v876_v38 = vmul.f32 0.5, %v875_v55  ;;  %564 = vadd.xlane.f32.xlu0 %v563_v23  ;;  %v1557_v31 = vmul.f32 %v3888_v37, %v1489_v20 }
 0x1a4   :  { %v1609_v49 = vadd.f32 %v3908_v35, %v1541_v12 }
 0x1a5   :  { %v877_v25 = vsub.f32 1.5, %v876_v38  ;;  %v1625_v60 = vadd.f32 %v3908_v35, %v1557_v31 }
 0x1a6   :  { %v2247_v40 = vpop.eup %2246  ;;  %2144 = vmatmul.msk.f32.gmra.mxu2 %vm81_vm0, %v1609_v49  ;;  %v2324_v49 = vld [vmem:[%s4771_s0 + $0x1f8] sm:$0xff] }
 0x1a7   :  { %v1034_v32 = vmul.f32 %v2247_v40, %v4093_v18  ;;  %v878_v34 = vmul.f32 %v2245_v51, %v877_v25  ;;  %2160 = vmatmul.msk.f32.gmra.mxu3 %vm81_vm0, %v1625_v60  ;;  %vm1040_vm3 = vweird.f32 %v2247_v40 }
 0x1a8   :  { %vm1041_vm5 = vmor %vm1039_vm4, %vm1040_vm3 }
 0x1a9   :  { %v1035_v54 = vmul.f32 %v2247_v40, %v1034_v32  ;;  %v882_v10 = vsel %vm881_vm2, %v2245_v51, %v878_v34  ;;  %v1987_v53 = vpop.f32.mrf.mxu3 }
 0x1aa   :  { %v1441_v26 = vmul.f32 %v882_v10, %v4883_v0  ;;  %2084 = vst.msk [vmem:[%s4775_s4 + $0x180] sm:$0xff] %vm2035_vm8, %v1987_v53  ;;  %v598_v14 = vpop.xlane.xlu0 %597 }
 0x1ab   :  { %v1036_v22 = vmul.f32 0.5, %v1035_v54  ;;  %v225_v13 = vpop.xlane.xlu2 %224  ;;  %v1939_v15 = vpop.f32.mrf.mxu2  ;;  %v706_v51 = vmul.f32 %v598_v14, %v2613_v41 }
 0x1ac   :  { %v328_v43 = vmul.f32 %v2613_v41, %v225_v13  ;;  %v1509_v8 = vmul.f32 %v3888_v37, %v1441_v26  ;;  %2068 = vst.msk [vmem:[%s4775_s4 + $0x100] sm:$0xff] %vm2035_vm8, %v1939_v15 }
 0x1ad   :  { %v1037_v48 = vsub.f32 1.5, %v1036_v22  ;;  %v770_v7 = vadd.f32 1e-05, %v706_v51 }
 0x1ae   :  { %v4150_v62 = vsub.f32 %v2323_v61, %v328_v43  ;;  %v1577_v21 = vadd.f32 %v3908_v35, %v1509_v8 }
 0x1af   :  { %v1038_v58 = vmul.f32 %v2247_v40, %v1037_v48  ;;  %v646_v4 = vpop.xlane.xlu1 %645  ;;  %v1843_v5 = vpop.f32.mrf.mxu0  ;;  %2248 = vrsqrt.f32 %v770_v7  ;;  %vm1209_vm7 = vweird.f32 %v770_v7 }
 0x1b0   :  { %v722_v18 = vmul.f32 %v646_v4, %v2613_v41  ;;  %v456_v30 = vmul.f32 %v4150_v62, %v4150_v62  ;;  %2112 = vmatmul.msk.f32.gmra.mxu0 %vm81_vm0, %v1577_v21  ;;  %2036 = vst.msk [vmem:[%s4775_s4] sm:$0xff] %vm2035_vm8, %v1843_v5 }
 0x1b1   :  { %v1042_v55 = vsel %vm1041_vm5, %v2247_v40, %v1038_v58 }
 0x1b2   :  { %v1457_v17 = vmul.f32 %v1042_v55, %v4884_v63  ;;  %v4166_v33 = vadd.f32 1e-05, %v722_v18  ;;  %v614_v20 = vsel %vm81_vm0, %v456_v30, 0.0  ;;  %v2325_v18 = vld [vmem:[%s4771_s0 + $0x78] sm:$0xff] }
 0x1b3   :  { %615 = vadd.xlane.f32.xlu1 %v614_v20  ;;  %v273_v23 = vpop.xlane.xlu0 %272 }
 0x1b4   :  { %v1525_v38 = vmul.f32 %v3888_v37, %v1457_v17  ;;  %2250 = vrsqrt.f32 %v4166_v33  ;;  %v344_v12 = vmul.f32 %v2613_v41, %v273_v23  ;;  %vm1369_vm11 = vweird.f32 %v4166_v33 }
 0x1b5   :  { %v1942_v40 = vpop.f32.mrf.mxu2  ;;  %v2249_v25 = vpop.eup %2248 }
 0x1b6   :  { %v1593_v31 = vadd.f32 %v3908_v35, %v1525_v38  ;;  %2069 = vst.msk [vmem:[%s4775_s4 + $0x108] sm:$0xff] %vm2035_vm8, %v1942_v40  ;;  %v4180_v32 = vsub.f32 %v2324_v49, %v344_v12  ;;  %v1204_v34 = vmul.f32 %v2249_v25, %v770_v7  ;;  %vm1210_vm6 = vweird.f32 %v2249_v25 }
 0x1b7   :  { %v1990_v54 = vpop.f32.mrf.mxu3  ;;  %v1894_v10 = vpop.f32.mrf.mxu1  ;;  %vm4214_vm9 = vmor %vm1209_vm7, %vm1210_vm6 }
 0x1b8   :  { %v550_v60 = vpop.xlane.xlu2 %549  ;;  %2128 = vmatmul.msk.f32.gmra.mxu1 %vm81_vm0, %v1593_v31  ;;  %2085 = vst.msk [vmem:[%s4775_s4 + $0x188] sm:$0xff] %vm2035_vm8, %v1990_v54  ;;  %v472_v0 = vmul.f32 %v4180_v32, %v4180_v32  ;;  %v1205_v53 = vmul.f32 %v2249_v25, %v1204_v34 }
 0x1b9   :  { %v690_v22 = vmul.f32 %v550_v60, %v2613_v41  ;;  %2053 = vst.msk [vmem:[%s4775_s4 + $0x88] sm:$0xff] %vm2035_vm8, %v1894_v10 }
 0x1ba   :  { %v2251_v26 = vpop.eup %2250  ;;  %v662_v15 = vsel %vm81_vm0, %v472_v0, 0.0  ;;  %v1206_v51 = vmul.f32 0.5, %v1205_v53 }
 0x1bb   :  { %v4194_v13 = vadd.f32 1e-05, %v690_v22  ;;  %v502_v48 = vpop.xlane.xlu1 %501  ;;  %v1364_v43 = vmul.f32 %v2251_v26, %v4166_v33  ;;  %v1846_v14 = vpop.f32.mrf.mxu0  ;;  %663 = vadd.xlane.f32.xlu2 %v662_v15  ;;  %vm1370_vm10 = vweird.f32 %v2251_v26  ;;  %v2326_v15 = vld [vmem:[%s4771_s0 + $0xf8] sm:$0xff] }
 0x1bc   :  { %v674_v8 = vmul.f32 %v502_v48, %v2613_v41  ;;  %2037 = vst.msk [vmem:[%s4775_s4 + $0x8] sm:$0xff] %vm2035_vm8, %v1846_v14  ;;  %v129_v58 = vpop.xlane.xlu0 %128  ;;  %v1207_v55 = vsub.f32 1.5, %v1206_v51  ;;  %vm4231_vm12 = vmor %vm1369_vm11, %vm1370_vm10 }
 0x1bd   :  { %2252 = vrsqrt.f32 %v4194_v13  ;;  %v1365_v61 = vmul.f32 %v2251_v26, %v1364_v43  ;;  %v296_v4 = vmul.f32 %v2613_v41, %v129_v58  ;;  %vm1049_vm14 = vweird.f32 %v4194_v13 }
 0x1be   :  { %v4204_v21 = vadd.f32 1e-05, %v674_v8  ;;  %v1208_v17 = vmul.f32 %v2249_v25, %v1207_v55 }
 0x1bf   :  { %v1366_v5 = vmul.f32 0.5, %v1365_v61  ;;  %v4211_v30 = vsub.f32 %v2325_v18, %v296_v4 }
 0x1c0   :  { %2254 = vrsqrt.f32 %v4204_v21  ;;  %v601_v63 = vpop.xlane.xlu2 %600  ;;  %v1212_v40 = vsel %vm4214_vm9, %v2249_v25, %v1208_v17  ;;  %vm889_vm2 = vweird.f32 %v4204_v21 }
 0x1c1   :  { %v707_v20 = vmul.f32 %v601_v63, %v2613_v41  ;;  %v1367_v23 = vsub.f32 1.5, %v1366_v5  ;;  %v424_v12 = vmul.f32 %v4211_v30, %v4211_v30  ;;  %v1474_v48 = vmul.f32 %v1212_v40, %v3254_v29 }
 0x1c2   :  { %v1993_v49 = vpop.f32.mrf.mxu3 }
 0x1c3   :  { %v2253_v31 = vpop.eup %2252  ;;  %v4222_v60 = vadd.f32 1e-05, %v707_v20  ;;  %v177_v34 = vpop.xlane.xlu1 %176  ;;  %v1368_v7 = vmul.f32 %v2251_v26, %v1367_v23  ;;  %2086 = vst.msk [vmem:[%s4775_s4 + $0x190] sm:$0xff] %vm2035_vm8, %v1993_v49  ;;  %v518_v33 = vsel %vm81_vm0, %v424_v12, 0.0  ;;  %v1542_v61 = vmul.f32 %v3888_v37, %v1474_v48 }
 0x1c4   :  { %v1044_v54 = vmul.f32 %v2253_v31, %v4194_v13  ;;  %v1849_v10 = vpop.f32.mrf.mxu0  ;;  %v1897_v22 = vpop.f32.mrf.mxu1  ;;  %v312_v0 = vmul.f32 %v2613_v41, %v177_v34  ;;  %519 = vadd.xlane.f32.xlu0 %v518_v33  ;;  %vm1050_vm13 = vweird.f32 %v2253_v31 }
 0x1c5   :  { %2038 = vst.msk [vmem:[%s4775_s4 + $0x10] sm:$0xff] %vm2035_vm8, %v1849_v10  ;;  %2256 = vrsqrt.f32 %v4222_v60  ;;  %v649_v53 = vpop.xlane.xlu0 %648  ;;  %v1372_v14 = vsel %vm4231_vm12, %v2251_v26, %v1368_v7  ;;  %v1610_v63 = vadd.f32 %v3908_v35, %v1542_v61  ;;  %vm1051_vm15 = vmor %vm1049_vm14, %vm1050_vm13  ;;  %vm1219_vm5 = vweird.f32 %v4222_v60 }
 0x1c6   :  { %v2255_v43 = vpop.eup %2254  ;;  %v1045_v8 = vmul.f32 %v2253_v31, %v1044_v54  ;;  %2054 = vst.msk [vmem:[%s4775_s4 + $0x90] sm:$0xff] %vm2035_vm8, %v1897_v22  ;;  %v4251_v51 = vsub.f32 %v2326_v15, %v312_v0  ;;  %v723_v29 = vmul.f32 %v649_v53, %v2613_v41  ;;  %v1490_v55 = vmul.f32 %v1372_v14, %v3339_v1 }
 0x1c7   :  { %v884_v58 = vmul.f32 %v2255_v43, %v4204_v21  ;;  %2145 = vmatmul.msk.f32.gmra.mxu2 %vm81_vm0, %v1610_v63  ;;  %vm890_vm1 = vweird.f32 %v2255_v43 }
 0x1c8   :  { %v1046_v26 = vmul.f32 0.5, %v1045_v8  ;;  %v440_v4 = vmul.f32 %v4251_v51, %v4251_v51  ;;  %v4259_v18 = vadd.f32 1e-05, %v723_v29  ;;  %v1558_v38 = vmul.f32 %v3888_v37, %v1490_v55  ;;  %vm4284_vm3 = vmor %vm889_vm2, %vm890_vm1 }
 0x1c9   :  { %v885_v5 = vmul.f32 %v2255_v43, %v884_v58 }
 0x1ca   :  { %v1047_v17 = vsub.f32 1.5, %v1046_v26  ;;  %v566_v20 = vsel %vm81_vm0, %v440_v4, 0.0  ;;  %v1945_v40 = vpop.f32.mrf.mxu2  ;;  %2258 = vrsqrt.f32 %v4259_v18  ;;  %v1626_v10 = vadd.f32 %v3908_v35, %v1558_v38 }
 0x1cb   :  { %v4264_v23 = vpop.eup %2256  ;;  %v886_v12 = vmul.f32 0.5, %v885_v5  ;;  %567 = vadd.xlane.f32.xlu1 %v566_v20  ;;  %v505_v49 = vpop.xlane.xlu1 %504  ;;  %2070 = vst.msk [vmem:[%s4775_s4 + $0x110] sm:$0xff] %vm2035_vm8, %v1945_v40  ;;  %vm1379_vm7 = vweird.f32 %v4259_v18 }
 0x1cc   :  { %v1048_v1 = vmul.f32 %v2253_v31, %v1047_v17  ;;  %v1214_v34 = vmul.f32 %v4264_v23, %v4222_v60  ;;  %v675_v7 = vmul.f32 %v505_v49, %v2613_v41  ;;  %2161 = vmatmul.msk.f32.gmra.mxu3 %vm81_vm0, %v1626_v10  ;;  %vm1220_vm4 = vweird.f32 %v4264_v23 }
 0x1cd   :  { %v887_v54 = vsub.f32 1.5, %v886_v12  ;;  %vm4318_vm6 = vmor %vm1219_vm5, %vm1220_vm4 }
 0x1ce   :  { %v1052_v22 = vsel %vm1051_vm15, %v2253_v31, %v1048_v1  ;;  %v1215_v0 = vmul.f32 %v4264_v23, %v1214_v34  ;;  %v4279_v13 = vadd.f32 1e-05, %v675_v7 }
 0x1cf   :  { %v888_v25 = vmul.f32 %v2255_v43, %v887_v54  ;;  %v1458_v33 = vmul.f32 %v1052_v22, %v3416_v3 }
 0x1d0   :  { %v1216_v48 = vmul.f32 0.5, %v1215_v0  ;;  %2260 = vrsqrt.f32 %v4279_v13  ;;  %v1852_v14 = vpop.f32.mrf.mxu0  ;;  %v553_v31 = vpop.xlane.xlu2 %552  ;;  %vm899_vm11 = vweird.f32 %v4279_v13 }
 0x1d1   :  { %v2259_v8 = vpop.eup %2258  ;;  %v892_v15 = vsel %vm4284_vm3, %v2255_v43, %v888_v25  ;;  %v1996_v58 = vpop.f32.mrf.mxu3  ;;  %2039 = vst.msk [vmem:[%s4775_s4 + $0x18] sm:$0xff] %vm2035_vm8, %v1852_v14  ;;  %v691_v21 = vmul.f32 %v553_v31, %v2613_v41  ;;  %v1526_v29 = vmul.f32 %v3888_v37, %v1458_v33 }
 0x1d2   :  { %v1900_v3 = vpop.f32.mrf.mxu1  ;;  %v1217_v61 = vsub.f32 1.5, %v1216_v48  ;;  %v1374_v26 = vmul.f32 %v2259_v8, %v4259_v18  ;;  %2087 = vst.msk [vmem:[%s4775_s4 + $0x198] sm:$0xff] %vm2035_vm8, %v1996_v58  ;;  %v1442_v43 = vmul.f32 %v892_v15, %v3428_v47  ;;  %v1948_v4 = vpop.f32.mrf.mxu2  ;;  %vm1380_vm9 = vweird.f32 %v2259_v8 }
 0x1d3   :  { %2055 = vst.msk [vmem:[%s4775_s4 + $0x98] sm:$0xff] %vm2035_vm8, %v1900_v3  ;;  %v4308_v55 = vadd.f32 1e-05, %v691_v21  ;;  %v1594_v5 = vadd.f32 %v3908_v35, %v1526_v29  ;;  %v652_v20 = vpop.xlane.xlu1 %651  ;;  %vm1381_vm10 = vmor %vm1379_vm7, %vm1380_vm9 }
 0x1d4   :  { %v1218_v63 = vmul.f32 %v4264_v23, %v1217_v61  ;;  %v1375_v17 = vmul.f32 %v2259_v8, %v1374_v26  ;;  %2071 = vst.msk [vmem:[%s4775_s4 + $0x118] sm:$0xff] %vm2035_vm8, %v1948_v4  ;;  %v1510_v47 = vmul.f32 %v3888_v37, %v1442_v43  ;;  %v724_v12 = vmul.f32 %v652_v20, %v2613_v41 }
 0x1d5   :  { %2262 = vrsqrt.f32 %v4308_v55  ;;  %2129 = vmatmul.msk.f32.gmra.mxu1 %vm81_vm0, %v1594_v5  ;;  %v604_v34 = vpop.xlane.xlu0 %603  ;;  %vm1059_vm15 = vweird.f32 %v4308_v55 }
 0x1d6   :  { %v2261_v60 = vpop.eup %2260  ;;  %v1222_v40 = vsel %vm4318_vm6, %v4264_v23, %v1218_v63  ;;  %v1376_v49 = vmul.f32 0.5, %v1375_v17  ;;  %v1578_v1 = vadd.f32 %v3908_v35, %v1510_v47  ;;  %v4330_v54 = vadd.f32 1e-05, %v724_v12 }
 0x1d7   :  { %v894_v7 = vmul.f32 %v2261_v60, %v4279_v13  ;;  %v708_v10 = vmul.f32 %v604_v34, %v2613_v41  ;;  %v1475_v0 = vmul.f32 %v1222_v40, %v3464_v44  ;;  %vm900_vm12 = vweird.f32 %v2261_v60 }
 0x1d8   :  { %v1377_v22 = vsub.f32 1.5, %v1376_v49  ;;  %2113 = vmatmul.msk.f32.gmra.mxu0 %vm81_vm0, %v1578_v1  ;;  %2264 = vrsqrt.f32 %v4330_v54  ;;  %vm4355_vm13 = vmor %vm899_vm11, %vm900_vm12  ;;  %vm1389_vm3 = vweird.f32 %v4330_v54 }
 0x1d9   :  { %v895_v25 = vmul.f32 %v2261_v60, %v894_v7  ;;  %v4337_v23 = vadd.f32 1e-05, %v708_v10  ;;  %v1543_v53 = vmul.f32 %v3888_v37, %v1475_v0 }
 0x1da   :  { %v1378_v33 = vmul.f32 %v2259_v8, %v1377_v22  ;;  %v1951_v15 = vpop.f32.mrf.mxu2 }
 0x1db   :  { %v2263_v48 = vpop.eup %2262  ;;  %v896_v14 = vmul.f32 0.5, %v895_v25  ;;  %2266 = vrsqrt.f32 %v4337_v23  ;;  %v1611_v58 = vadd.f32 %v3908_v35, %v1543_v53  ;;  %2072 = vst.msk [vmem:[%s4775_s4 + $0x120] sm:$0xff] %vm2035_vm8, %v1951_v15  ;;  %vm1229_vm6 = vweird.f32 %v4337_v23 }
 0x1dc   :  { %v1382_v31 = vsel %vm1381_vm10, %v2259_v8, %v1378_v33  ;;  %v1054_v18 = vmul.f32 %v2263_v48, %v4308_v55  ;;  %v508_v3 = vpop.xlane.xlu2 %507  ;;  %vm1060_vm14 = vweird.f32 %v2263_v48 }
 0x1dd   :  { %v897_v44 = vsub.f32 1.5, %v896_v14  ;;  %v1491_v21 = vmul.f32 %v1382_v31, %v3472_v57  ;;  %2146 = vmatmul.msk.f32.gmra.mxu2 %vm81_vm0, %v1611_v58  ;;  %v676_v8 = vmul.f32 %v508_v3, %v2613_v41  ;;  %v556_v61 = vpop.xlane.xlu0 %555  ;;  %vm1061_vm1 = vmor %vm1059_vm15, %vm1060_vm14 }
 0x1de   :  { %v1055_v29 = vmul.f32 %v2263_v48, %v1054_v18  ;;  %v4351_v26 = vpop.eup %2264  ;;  %v692_v13 = vmul.f32 %v556_v61, %v2613_v41 }
 0x1df   :  { %v898_v43 = vmul.f32 %v2261_v60, %v897_v44  ;;  %v1559_v4 = vmul.f32 %v3888_v37, %v1491_v21  ;;  %v1384_v57 = vmul.f32 %v4351_v26, %v4330_v54  ;;  %v4361_v17 = vadd.f32 1e-05, %v676_v8  ;;  %v607_v47 = vpop.xlane.xlu1 %606 }
 0x1e0   :  { %v1056_v63 = vmul.f32 0.5, %v1055_v29  ;;  %v4365_v12 = vadd.f32 1e-05, %v692_v13  ;;  %v709_v49 = vmul.f32 %v607_v47, %v2613_v41  ;;  %vm1390_vm2 = vweird.f32 %v4351_v26 }
 0x1e1   :  { %v2267_v20 = vpop.eup %2266  ;;  %v902_v38 = vsel %vm4355_vm13, %v2261_v60, %v898_v43  ;;  %v1627_v40 = vadd.f32 %v3908_v35, %v1559_v4  ;;  %v1385_v34 = vmul.f32 %v4351_v26, %v1384_v57  ;;  %2268 = vrsqrt.f32 %v4361_v17  ;;  %vm4397_vm5 = vmor %vm1389_vm3, %vm1390_vm2 }
 0x1e2   :  { %v1057_v1 = vsub.f32 1.5, %v1056_v63  ;;  %v1224_v7 = vmul.f32 %v2267_v20, %v4337_v23  ;;  %v1443_v60 = vmul.f32 %v902_v38, %v3526_v27  ;;  %2270 = vrsqrt.f32 %v4365_v12 }
 0x1e3   :  { %2162 = vmatmul.msk.f32.gmra.mxu3 %vm81_vm0, %v1627_v40  ;;  %v1386_v22 = vmul.f32 0.5, %v1385_v34  ;;  %v4377_v33 = vadd.f32 1e-05, %v709_v49  ;;  %vm1230_vm4 = vweird.f32 %v2267_v20  ;;  %vm1069_vm9 = vweird.f32 %v4365_v12 }
 0x1e4   :  { %v1058_v10 = vmul.f32 %v2263_v48, %v1057_v1  ;;  %v1225_v0 = vmul.f32 %v2267_v20, %v1224_v7  ;;  %v1511_v25 = vmul.f32 %v3888_v37, %v1443_v60  ;;  %vm1231_vm7 = vmor %vm1229_vm6, %vm1230_vm4  ;;  %vm909_vm12 = vweird.f32 %v4361_v17 }
 0x1e5   :  { %v1387_v14 = vsub.f32 1.5, %v1386_v22  ;;  %v1855_v31 = vpop.f32.mrf.mxu0  ;;  %v1903_v18 = vpop.f32.mrf.mxu1  ;;  %2272 = vrsqrt.f32 %v4377_v33  ;;  %vm1239_vm14 = vweird.f32 %v4377_v33 }
 0x1e6   :  { %v1062_v53 = vsel %vm1061_vm1, %v2263_v48, %v1058_v10  ;;  %v1226_v55 = vmul.f32 0.5, %v1225_v0  ;;  %v1579_v15 = vadd.f32 %v3908_v35, %v1511_v25  ;;  %v1999_v27 = vpop.f32.mrf.mxu3  ;;  %2040 = vst.msk [vmem:[%s4775_s4 + $0x20] sm:$0xff] %vm2035_vm8, %v1855_v31 }
 0x1e7   :  { %v1459_v58 = vmul.f32 %v1062_v53, %v3585_v39  ;;  %v1388_v48 = vmul.f32 %v4351_v26, %v1387_v14  ;;  %2088 = vst.msk [vmem:[%s4775_s4 + $0x1a0] sm:$0xff] %vm2035_vm8, %v1999_v27  ;;  %v655_v3 = vpop.xlane.xlu2 %654  ;;  %v4393_v21 = vpop.eup %2268 }
 0x1e8   :  { %v1227_v44 = vsub.f32 1.5, %v1226_v55  ;;  %2114 = vmatmul.msk.f32.gmra.mxu0 %vm81_vm0, %v1579_v15  ;;  %2056 = vst.msk [vmem:[%s4775_s4 + $0xa0] sm:$0xff] %vm2035_vm8, %v1903_v18  ;;  %v725_v54 = vmul.f32 %v655_v3, %v2613_v41  ;;  %v2271_v8 = vpop.eup %2270  ;;  %v904_v13 = vmul.f32 %v4393_v21, %v4361_v17  ;;  %vm910_vm10 = vweird.f32 %v4393_v21 }
 0x1e9   :  { %v1527_v39 = vmul.f32 %v3888_v37, %v1459_v58  ;;  %v1392_v61 = vsel %vm4397_vm5, %v4351_v26, %v1388_v48  ;;  %v1064_v4 = vmul.f32 %v2271_v8, %v4365_v12  ;;  %vm1070_vm11 = vweird.f32 %v2271_v8  ;;  %vm4436_vm13 = vmor %vm909_vm12, %vm910_vm10 }
 0x1ea   :  { %v1228_v43 = vmul.f32 %v2267_v20, %v1227_v44  ;;  %v4416_v63 = vadd.f32 1e-05, %v725_v54  ;;  %v905_v47 = vmul.f32 %v4393_v21, %v904_v13  ;;  %v1492_v38 = vmul.f32 %v1392_v61, %v3628_v24  ;;  %vm1071_vm15 = vmor %vm1069_vm9, %vm1070_vm11 }
 0x1eb   :  { %v1595_v5 = vadd.f32 %v3908_v35, %v1527_v39  ;;  %v2273_v40 = vpop.eup %2272  ;;  %v1065_v26 = vmul.f32 %v2271_v8, %v1064_v4  ;;  %v4474_v4 = vld [vmem:[%s4772_s1] ss:$0 sm:$0xff] }
 0x1ec   :  { %v1232_v57 = vsel %vm1231_vm7, %v2267_v20, %v1228_v43  ;;  %2274 = vrsqrt.f32 %v4416_v63  ;;  %v906_v49 = vmul.f32 0.5, %v905_v47  ;;  %v1234_v1 = vmul.f32 %v2273_v40, %v4377_v33  ;;  %v4484_v47 = vld [vmem:[%s4773_s2] ss:$0 sm:$0xff] }
 0x1ed   :  { %2130 = vmatmul.msk.f32.gmra.mxu1 %vm81_vm0, %v1595_v5  ;;  %v1476_v23 = vmul.f32 %v1232_v57, %v3638_v16  ;;  %v1560_v34 = vmul.f32 %v3888_v37, %v1492_v38  ;;  %v1066_v7 = vmul.f32 0.5, %v1065_v26  ;;  %vm1240_vm1 = vweird.f32 %v2273_v40 }
 0x1ee   :  { %v907_v60 = vsub.f32 1.5, %v906_v49  ;;  %v1235_v24 = vmul.f32 %v2273_v40, %v1234_v1  ;;  %vm1241_vm2 = vmor %vm1239_vm14, %vm1240_vm1  ;;  %vm1399_vm4 = vweird.f32 %v4416_v63 }
 0x1ef   :  { %v1544_v20 = vmul.f32 %v3888_v37, %v1476_v23  ;;  %v1628_v10 = vadd.f32 %v3908_v35, %v1560_v34  ;;  %v559_v22 = vpop.xlane.xlu1 %558  ;;  %v1067_v0 = vsub.f32 1.5, %v1066_v7 }
 0x1f0   :  { %v693_v25 = vmul.f32 %v559_v22, %v2613_v41  ;;  %v908_v53 = vmul.f32 %v4393_v21, %v907_v60  ;;  %v1236_v14 = vmul.f32 0.5, %v1235_v24 }
 0x1f1   :  { %v1612_v16 = vadd.f32 %v3908_v35, %v1544_v20  ;;  %v1954_v55 = vpop.f32.mrf.mxu2  ;;  %v2002_v37 = vpop.f32.mrf.mxu3  ;;  %2163 = vmatmul.msk.f32.gmra.mxu3 %vm81_vm0, %v1628_v10  ;;  %v1068_v15 = vmul.f32 %v2271_v8, %v1067_v0 }
 0x1f2   :  { %v2275_v31 = vpop.eup %2274  ;;  %2073 = vst.msk [vmem:[%s4775_s4 + $0x128] sm:$0xff] %vm2035_vm8, %v1954_v55  ;;  %v1858_v35 = vpop.f32.mrf.mxu0  ;;  %v4446_v17 = vadd.f32 1e-05, %v693_v25  ;;  %v912_v58 = vsel %vm4436_vm13, %v4393_v21, %v908_v53  ;;  %v1237_v48 = vsub.f32 1.5, %v1236_v14 }
 0x1f3   :  { %2147 = vmatmul.msk.f32.gmra.mxu2 %vm81_vm0, %v1612_v16  ;;  %v511_v27 = vpop.xlane.xlu0 %510  ;;  %v1394_v44 = vmul.f32 %v2275_v31, %v4416_v63  ;;  %2089 = vst.msk [vmem:[%s4775_s4 + $0x1a8] sm:$0xff] %vm2035_vm8, %v2002_v37  ;;  %v1072_v3 = vsel %vm1071_vm15, %v2271_v8, %v1068_v15  ;;  %v1444_v39 = vmul.f32 %v912_v58, %v3691_v50  ;;  %vm1400_vm3 = vweird.f32 %v2275_v31 }
 0x1f4   :  { %2041 = vst.msk [vmem:[%s4775_s4 + $0x28] sm:$0xff] %vm2035_vm8, %v1858_v35  ;;  %2276 = vrsqrt.f32 %v4446_v17  ;;  %v677_v12 = vmul.f32 %v511_v27, %v2613_v41  ;;  %v1238_v21 = vmul.f32 %v2273_v40, %v1237_v48  ;;  %v1460_v54 = vmul.f32 %v1072_v3, %v3678_v11  ;;  %vm1401_vm5 = vmor %vm1399_vm4, %vm1400_vm3 }
 0x1f5   :  { %v1395_v29 = vmul.f32 %v2275_v31, %v1394_v44  ;;  %v610_v8 = vpop.xlane.xlu2 %609  ;;  %v1512_v5 = vmul.f32 %v4474_v4, %v1444_v39  ;;  %vm1079_vm7 = vweird.f32 %v4446_v17 }
 0x1f6   :  { %v4469_v61 = vadd.f32 1e-05, %v677_v12  ;;  %v1242_v43 = vsel %vm1241_vm2, %v2273_v40, %v1238_v21  ;;  %v1528_v57 = vmul.f32 %v4474_v4, %v1460_v54  ;;  %v710_v11 = vmul.f32 %v610_v8, %v2613_v41 }
 0x1f7   :  { %v1396_v13 = vmul.f32 0.5, %v1395_v29  ;;  %v1477_v50 = vmul.f32 %v1242_v43, %v3735_v36  ;;  %v1580_v38 = vadd.f32 %v4484_v47, %v1512_v5 }
 0x1f8   :  { %2278 = vrsqrt.f32 %v4469_v61  ;;  %v1596_v40 = vadd.f32 %v4484_v47, %v1528_v57  ;;  %v4488_v23 = vadd.f32 1e-05, %v710_v11  ;;  %vm919_vm11 = vweird.f32 %v4469_v61 }
 0x1f9   :  { %v1397_v33 = vsub.f32 1.5, %v1396_v13  ;;  %v1545_v1 = vmul.f32 %v4474_v4, %v1477_v50  ;;  %2115 = vmatmul.msk.f32.gmra.mxu0 %vm81_vm0, %v1580_v38 }
 0x1fa   :  { %v2277_v26 = vpop.eup %2276  ;;  %2131 = vmatmul.msk.f32.gmra.mxu1 %vm81_vm0, %v1596_v40  ;;  %2280 = vrsqrt.f32 %v4488_v23  ;;  %vm1249_vm14 = vweird.f32 %v4488_v23 }
 0x1fb   :  { %v658_v49 = vpop.xlane.xlu0 %657  ;;  %v1398_v34 = vmul.f32 %v2275_v31, %v1397_v33  ;;  %v1074_v36 = vmul.f32 %v2277_v26, %v4446_v17  ;;  %v1613_v60 = vadd.f32 %v4484_v47, %v1545_v1  ;;  %vm1080_vm6 = vweird.f32 %v2277_v26 }
 0x1fc   :  { %v726_v7 = vmul.f32 %v658_v49, %v2613_v41  ;;  %v1906_v20 = vpop.f32.mrf.mxu1  ;;  %vm1081_vm9 = vmor %vm1079_vm7, %vm1080_vm6 }
 0x1fd   :  { %v1402_v24 = vsel %vm1401_vm5, %v2275_v31, %v1398_v34  ;;  %v1075_v10 = vmul.f32 %v2277_v26, %v1074_v36  ;;  %2057 = vst.msk [vmem:[%s4775_s4 + $0xa8] sm:$0xff] %vm2035_vm8, %v1906_v20  ;;  %v514_v22 = vpop.xlane.xlu1 %513  ;;  %2148 = vmatmul.msk.f32.gmra.mxu2 %vm81_vm0, %v1613_v60 }
 0x1fe   :  { %v4502_v63 = vadd.f32 1e-05, %v726_v7  ;;  %v2279_v0 = vpop.eup %2278  ;;  %v678_v16 = vmul.f32 %v514_v22, %v2613_v41  ;;  %v1493_v25 = vmul.f32 %v1402_v24, %v3797_v28 }
 0x1ff   :  { %v1076_v53 = vmul.f32 0.5, %v1075_v10  ;;  %v914_v14 = vmul.f32 %v2279_v0, %v4469_v61  ;;  %vm920_vm10 = vweird.f32 %v2279_v0 }
 0x200   :  { %2282 = vrsqrt.f32 %v4502_v63  ;;  %v4509_v55 = vadd.f32 1e-05, %v678_v16  ;;  %v1561_v37 = vmul.f32 %v4474_v4, %v1493_v25  ;;  %v2281_v15 = vpop.eup %2280  ;;  %vm921_vm12 = vmor %vm919_vm11, %vm920_vm10  ;;  %vm1409_vm1 = vweird.f32 %v4502_v63 }
 0x201   :  { %v1077_v31 = vsub.f32 1.5, %v1076_v53  ;;  %v915_v18 = vmul.f32 %v2279_v0, %v914_v14  ;;  %v1244_v58 = vmul.f32 %v2281_v15, %v4488_v23  ;;  %vm1250_vm13 = vweird.f32 %v2281_v15 }
 0x202   :  { %2284 = vrsqrt.f32 %v4509_v55  ;;  %v1629_v35 = vadd.f32 %v4484_v47, %v1561_v37  ;;  %vm1251_vm15 = vmor %vm1249_vm14, %vm1250_vm13  ;;  %vm929_vm4 = vweird.f32 %v4509_v55 }
 0x203   :  { %v1078_v27 = vmul.f32 %v2277_v26, %v1077_v31  ;;  %v916_v28 = vmul.f32 0.5, %v915_v18  ;;  %v1245_v12 = vmul.f32 %v2281_v15, %v1244_v58 }
 0x204   :  { %2164 = vmatmul.msk.f32.gmra.mxu3 %vm81_vm0, %v1629_v35 }
 0x205   :  { %v1082_v44 = vsel %vm1081_vm9, %v2277_v26, %v1078_v27  ;;  %v917_v3 = vsub.f32 1.5, %v916_v28  ;;  %v1246_v17 = vmul.f32 0.5, %v1245_v12  ;;  %v1861_v13 = vpop.f32.mrf.mxu0 }
 0x206   :  { %v2283_v48 = vpop.eup %2282  ;;  %v562_v21 = vpop.xlane.xlu2 %561  ;;  %v1461_v54 = vmul.f32 %v1082_v44, %v3835_v45  ;;  %2042 = vst.msk [vmem:[%s4775_s4 + $0x30] sm:$0xff] %vm2035_vm8, %v1861_v13 }
 0x207   :  { %v1404_v29 = vmul.f32 %v2283_v48, %v4502_v63  ;;  %v694_v39 = vmul.f32 %v562_v21, %v2613_v41  ;;  %v918_v8 = vmul.f32 %v2279_v0, %v917_v3  ;;  %v2005_v43 = vpop.f32.mrf.mxu3  ;;  %v1909_v50 = vpop.f32.mrf.mxu1  ;;  %v1247_v40 = vsub.f32 1.5, %v1246_v17 }
 0x208   :  { %v2285_v5 = vpop.eup %2284  ;;  %v1957_v11 = vpop.f32.mrf.mxu2  ;;  %2090 = vst.msk [vmem:[%s4775_s4 + $0x1b0] sm:$0xff] %vm2035_vm8, %v2005_v43  ;;  %v1529_v45 = vmul.f32 %v4474_v4, %v1461_v54  ;;  %vm1410_vm2 = vweird.f32 %v2283_v48 }
 0x209   :  { %v1405_v57 = vmul.f32 %v2283_v48, %v1404_v29  ;;  %v4525_v33 = vadd.f32 1e-05, %v694_v39  ;;  %v922_v38 = vsel %vm921_vm12, %v2279_v0, %v918_v8  ;;  %v924_v61 = vmul.f32 %v2285_v5, %v4509_v55  ;;  %2074 = vst.msk [vmem:[%s4775_s4 + $0x130] sm:$0xff] %vm2035_vm8, %v1957_v11  ;;  %vm1411_vm3 = vmor %vm1409_vm1, %vm1410_vm2 }
 0x20a   :  { %v1445_v49 = vmul.f32 %v922_v38, %v3869_v19  ;;  %v1248_v1 = vmul.f32 %v2281_v15, %v1247_v40  ;;  %2058 = vst.msk [vmem:[%s4775_s4 + $0xb0] sm:$0xff] %vm2035_vm8, %v1909_v50  ;;  %v1597_v36 = vadd.f32 %v4484_v47, %v1529_v45  ;;  %vm930_vm5 = vweird.f32 %v2285_v5 }
 0x20b   :  { %v1406_v26 = vmul.f32 0.5, %v1405_v57  ;;  %2286 = vrsqrt.f32 %v4525_v33  ;;  %v925_v34 = vmul.f32 %v2285_v5, %v924_v61  ;;  %vm931_vm6 = vmor %vm929_vm4, %vm930_vm5  ;;  %vm1089_vm9 = vweird.f32 %v4525_v33 }
 0x20c   :  { %v1513_v20 = vmul.f32 %v4474_v4, %v1445_v49  ;;  %v1252_v60 = vsel %vm1251_vm15, %v2281_v15, %v1248_v1  ;;  %2132 = vmatmul.msk.f32.gmra.mxu1 %vm81_vm0, %v1597_v36 }
 0x20d   :  { %v1407_v7 = vsub.f32 1.5, %v1406_v26  ;;  %v926_v19 = vmul.f32 0.5, %v925_v34  ;;  %v1478_v10 = vmul.f32 %v1252_v60, %v3899_v9  ;;  %v661_v0 = vpop.xlane.xlu1 %660 }
 0x20e   :  { %v1581_v24 = vadd.f32 %v4484_v47, %v1513_v20  ;;  %v613_v16 = vpop.xlane.xlu0 %612  ;;  %v727_v53 = vmul.f32 %v661_v0, %v2613_v41 }
 0x20f   :  { %v1408_v23 = vmul.f32 %v2283_v48, %v1407_v7  ;;  %v927_v22 = vsub.f32 1.5, %v926_v19  ;;  %v711_v14 = vmul.f32 %v613_v16, %v2613_v41  ;;  %v1546_v37 = vmul.f32 %v4474_v4, %v1478_v10 }
 0x210   :  { %2116 = vmatmul.msk.f32.gmra.mxu0 %vm81_vm0, %v1581_v24  ;;  %v791_v55 = vadd.f32 1e-05, %v727_v53 }
 0x211   :  { %v2287_v63 = vpop.eup %2286  ;;  %v1412_v25 = vsel %vm1411_vm3, %v2283_v48, %v1408_v23  ;;  %v928_v31 = vmul.f32 %v2285_v5, %v927_v22  ;;  %v4557_v15 = vadd.f32 1e-05, %v711_v14  ;;  %v1614_v27 = vadd.f32 %v4484_v47, %v1546_v37 }
 0x212   :  { %v1084_v9 = vmul.f32 %v2287_v63, %v4525_v33  ;;  %v1494_v18 = vmul.f32 %v1412_v25, %v3914_v52  ;;  %v1960_v35 = vpop.f32.mrf.mxu2  ;;  %2288 = vrsqrt.f32 %v791_v55  ;;  %vm1090_vm7 = vweird.f32 %v2287_v63 }
 0x213   :  { %v932_v28 = vsel %vm931_vm6, %v2285_v5, %v928_v31  ;;  %2075 = vst.msk [vmem:[%s4775_s4 + $0x138] sm:$0xff] %vm2035_vm8, %v1960_v35  ;;  %2149 = vmatmul.msk.f32.gmra.mxu2 %vm81_vm0, %v1614_v27  ;;  %2290 = vrsqrt.f32 %v4557_v15  ;;  %vm1091_vm10 = vmor %vm1089_vm9, %vm1090_vm7  ;;  %vm1419_vm13 = vweird.f32 %v791_v55  ;;  %vm1259_vm15 = vweird.f32 %v4557_v15 }
 0x214   :  { %v1085_v58 = vmul.f32 %v2287_v63, %v1084_v9  ;;  %v1562_v48 = vmul.f32 %v4474_v4, %v1494_v18  ;;  %v517_v52 = vpop.xlane.xlu2 %516  ;;  %v1446_v44 = vmul.f32 %v932_v28, %v3972_v56 }
 0x215   :  { %v679_v21 = vmul.f32 %v517_v52, %v2613_v41 }
 0x216   :  { %v1086_v3 = vmul.f32 0.5, %v1085_v58  ;;  %v1630_v12 = vadd.f32 %v4484_v47, %v1562_v48  ;;  %v1514_v29 = vmul.f32 %v4474_v4, %v1446_v44  ;;  %v565_v8 = vpop.xlane.xlu0 %564 }
 0x217   :  { %v743_v54 = vadd.f32 1e-05, %v679_v21  ;;  %v695_v17 = vmul.f32 %v565_v8, %v2613_v41 }
 0x218   :  { %v1087_v39 = vsub.f32 1.5, %v1086_v3  ;;  %2165 = vmatmul.msk.f32.gmra.mxu3 %vm81_vm0, %v1630_v12  ;;  %v1582_v43 = vadd.f32 %v4484_v47, %v1514_v29  ;;  %v2289_v13 = vpop.eup %2288 }
 0x219   :  { %2292 = vrsqrt.f32 %v743_v54  ;;  %v4575_v5 = vadd.f32 1e-05, %v695_v17  ;;  %v2291_v57 = vpop.eup %2290  ;;  %v1414_v50 = vmul.f32 %v2289_v13, %v791_v55  ;;  %vm1420_vm11 = vweird.f32 %v2289_v13 }
 0x21a   :  { %v1088_v56 = vmul.f32 %v2287_v63, %v1087_v39  ;;  %2117 = vmatmul.msk.f32.gmra.mxu0 %vm81_vm0, %v1582_v43  ;;  %v1254_v45 = vmul.f32 %v2291_v57, %v4557_v15  ;;  %vm1260_vm12 = vweird.f32 %v2291_v57  ;;  %vm1421_vm14 = vmor %vm1419_vm13, %vm1420_vm11  ;;  %vm939_vm3 = vweird.f32 %v743_v54 }
 0x21b   :  { %2294 = vrsqrt.f32 %v4575_v5  ;;  %v2008_v38 = vpop.f32.mrf.mxu3  ;;  %v1415_v40 = vmul.f32 %v2289_v13, %v1414_v50  ;;  %vm1261_vm1 = vmor %vm1259_vm15, %vm1260_vm12  ;;  %vm1099_vm4 = vweird.f32 %v4575_v5 }
 0x21c   :  { %v1092_v11 = vsel %vm1091_vm10, %v2287_v63, %v1088_v56  ;;  %2091 = vst.msk [vmem:[%s4775_s4 + $0x1b8] sm:$0xff] %vm2035_vm8, %v2008_v38  ;;  %v1255_v26 = vmul.f32 %v2291_v57, %v1254_v45  ;;  %v1912_v34 = vpop.f32.mrf.mxu1 }
 0x21d   :  { %v1864_v33 = vpop.f32.mrf.mxu0  ;;  %v1462_v61 = vmul.f32 %v1092_v11, %v4009_v2  ;;  %v1416_v1 = vmul.f32 0.5, %v1415_v40  ;;  %2059 = vst.msk [vmem:[%s4775_s4 + $0xb8] sm:$0xff] %vm2035_vm8, %v1912_v34 }
 0x21e   :  { %2043 = vst.msk [vmem:[%s4775_s4 + $0x38] sm:$0xff] %vm2035_vm8, %v1864_v33  ;;  %v1256_v7 = vmul.f32 0.5, %v1255_v26 }
 0x21f   :  { %v2293_v49 = vpop.eup %2292  ;;  %v1530_v36 = vmul.f32 %v4474_v4, %v1462_v61  ;;  %v1417_v60 = vsub.f32 1.5, %v1416_v1 }
 0x220   :  { %v934_v20 = vmul.f32 %v2293_v49, %v743_v54  ;;  %v1257_v23 = vsub.f32 1.5, %v1256_v7  ;;  %vm940_vm2 = vweird.f32 %v2293_v49 }
 0x221   :  { %v1598_v2 = vadd.f32 %v4484_v47, %v1530_v36  ;;  %v2295_v19 = vpop.eup %2294  ;;  %v1418_v10 = vmul.f32 %v2289_v13, %v1417_v60  ;;  %vm4603_vm5 = vmor %vm939_vm3, %vm940_vm2 }
 0x222   :  { %v935_v24 = vmul.f32 %v2293_v49, %v934_v20  ;;  %v1094_v22 = vmul.f32 %v2295_v19, %v4575_v5  ;;  %v1258_v0 = vmul.f32 %v2291_v57, %v1257_v23  ;;  %vm1100_vm6 = vweird.f32 %v2295_v19 }
 0x223   :  { %2133 = vmatmul.msk.f32.gmra.mxu1 %vm81_vm0, %v1598_v2  ;;  %v1422_v63 = vsel %vm1421_vm14, %v2289_v13, %v1418_v10  ;;  %vm1101_vm7 = vmor %vm1099_vm4, %vm1100_vm6 }
 0x224   :  { %v936_v16 = vmul.f32 0.5, %v935_v24  ;;  %v1095_v25 = vmul.f32 %v2295_v19, %v1094_v22  ;;  %v1262_v53 = vsel %vm1261_vm1, %v2291_v57, %v1258_v0  ;;  %v1495_v31 = vmul.f32 %v1422_v63, %v4038_v46 }
 0x225   :  { %v1479_v55 = vmul.f32 %v1262_v53, %v4043_v42 }
 0x226   :  { %v937_v14 = vsub.f32 1.5, %v936_v16  ;;  %v616_v37 = vpop.xlane.xlu1 %615  ;;  %v1096_v9 = vmul.f32 0.5, %v1095_v25  ;;  %v1563_v15 = vmul.f32 %v4474_v4, %v1495_v31 }
 0x227   :  { %v712_v18 = vmul.f32 %v616_v37, %v2613_v41  ;;  %v1547_v46 = vmul.f32 %v4474_v4, %v1479_v55 }
 0x228   :  { %v938_v35 = vmul.f32 %v2293_v49, %v937_v14  ;;  %v1097_v28 = vsub.f32 1.5, %v1096_v9  ;;  %v1631_v42 = vadd.f32 %v4484_v47, %v1563_v15 }
 0x229   :  { %v776_v58 = vadd.f32 1e-05, %v712_v18  ;;  %v1963_v52 = vpop.f32.mrf.mxu2  ;;  %v1615_v3 = vadd.f32 %v4484_v47, %v1547_v46 }
 0x22a   :  { %v942_v48 = vsel %vm4603_vm5, %v2293_v49, %v938_v35  ;;  %v1098_v44 = vmul.f32 %v2295_v19, %v1097_v28  ;;  %2076 = vst.msk [vmem:[%s4775_s4 + $0x140] sm:$0xff] %vm2035_vm8, %v1963_v52  ;;  %v2011_v12 = vpop.f32.mrf.mxu3  ;;  %2166 = vmatmul.msk.f32.gmra.mxu3 %vm81_vm0, %v1631_v42 }
 0x22b   :  { %2296 = vrsqrt.f32 %v776_v58  ;;  %2092 = vst.msk [vmem:[%s4775_s4 + $0x1c0] sm:$0xff] %vm2035_vm8, %v2011_v12  ;;  %v1447_v21 = vmul.f32 %v942_v48, %v4089_v6  ;;  %2150 = vmatmul.msk.f32.gmra.mxu2 %vm81_vm0, %v1615_v3  ;;  %vm1269_vm9 = vweird.f32 %v776_v58 }
 0x22c   :  { %v1102_v29 = vsel %vm1101_vm7, %v2295_v19, %v1098_v44 }
 0x22d   :  { %v1867_v39 = vpop.f32.mrf.mxu0  ;;  %v1515_v54 = vmul.f32 %v4474_v4, %v1447_v21  ;;  %v1463_v8 = vmul.f32 %v1102_v29, %v4100_v59 }
 0x22e   :  { %2044 = vst.msk [vmem:[%s4775_s4 + $0x40] sm:$0xff] %vm2035_vm8, %v1867_v39  ;;  %v664_v17 = vpop.xlane.xlu2 %663 }
 0x22f   :  { %v728_v43 = vmul.f32 %v664_v17, %v2613_v41  ;;  %v1583_v56 = vadd.f32 %v4484_v47, %v1515_v54  ;;  %v1531_v6 = vmul.f32 %v4474_v4, %v1463_v8 }
 0x231   :  { %v2297_v13 = vpop.eup %2296  ;;  %v792_v57 = vadd.f32 1e-05, %v728_v43  ;;  %2118 = vmatmul.msk.f32.gmra.mxu0 %vm81_vm0, %v1583_v56  ;;  %v1599_v11 = vadd.f32 %v4484_v47, %v1531_v6 }
 0x232   :  { %v1264_v5 = vmul.f32 %v2297_v13, %v776_v58  ;;  %vm1270_vm10 = vweird.f32 %v2297_v13 }
 0x233   :  { %2298 = vrsqrt.f32 %v792_v57  ;;  %2134 = vmatmul.msk.f32.gmra.mxu1 %vm81_vm0, %v1599_v11  ;;  %vm1271_vm11 = vmor %vm1269_vm9, %vm1270_vm10  ;;  %vm1429_vm13 = vweird.f32 %v792_v57 }
 0x234   :  { %v1265_v50 = vmul.f32 %v2297_v13, %v1264_v5 }
 0x235   :  { %v1915_v45 = vpop.f32.mrf.mxu1 }
 0x236   :  { %2060 = vst.msk [vmem:[%s4775_s4 + $0xc0] sm:$0xff] %vm2035_vm8, %v1915_v45  ;;  %v1266_v59 = vmul.f32 0.5, %v1265_v50 }
 0x237   :  { %v520_v40 = vpop.xlane.xlu0 %519 }
 0x238   :  { %v1267_v38 = vsub.f32 1.5, %v1266_v59  ;;  %v680_v33 = vmul.f32 %v520_v40, %v2613_v41 }
 0x239   :  { %v2299_v61 = vpop.eup %2298 }
 0x23a   :  { %v1268_v26 = vmul.f32 %v2297_v13, %v1267_v38  ;;  %v1424_v49 = vmul.f32 %v2299_v61, %v792_v57  ;;  %v744_v1 = vadd.f32 1e-05, %v680_v33  ;;  %vm1430_vm12 = vweird.f32 %v2299_v61 }
 0x23b   :  { %vm1431_vm14 = vmor %vm1429_vm13, %vm1430_vm12 }
 0x23c   :  { %v1272_v34 = vsel %vm1271_vm11, %v2297_v13, %v1268_v26  ;;  %v1425_v36 = vmul.f32 %v2299_v61, %v1424_v49  ;;  %2300 = vrsqrt.f32 %v744_v1  ;;  %vm949_vm1 = vweird.f32 %v744_v1 }
 0x23d   :  { %v1480_v20 = vmul.f32 %v1272_v34, %v4150_v62 }
 0x23e   :  { %v568_v7 = vpop.xlane.xlu1 %567  ;;  %v1426_v2 = vmul.f32 0.5, %v1425_v36 }
 0x23f   :  { %v696_v60 = vmul.f32 %v568_v7, %v2613_v41  ;;  %v1548_v19 = vmul.f32 %v4474_v4, %v1480_v20 }
 0x240   :  { %v1427_v24 = vsub.f32 1.5, %v1426_v2 }
 0x241   :  { %v760_v23 = vadd.f32 1e-05, %v696_v60  ;;  %v1616_v10 = vadd.f32 %v4484_v47, %v1548_v19 }
 0x242   :  { %v2301_v22 = vpop.eup %2300  ;;  %v1428_v0 = vmul.f32 %v2299_v61, %v1427_v24 }
 0x243   :  { %2302 = vrsqrt.f32 %v760_v23  ;;  %2151 = vmatmul.msk.f32.gmra.mxu2 %vm81_vm0, %v1616_v10  ;;  %v944_v16 = vmul.f32 %v2301_v22, %v744_v1  ;;  %vm950_vm15 = vweird.f32 %v2301_v22  ;;  %vm1109_vm4 = vweird.f32 %v760_v23 }
 0x244   :  { %v1432_v63 = vsel %vm1431_vm14, %v2299_v61, %v1428_v0  ;;  %vm951_vm2 = vmor %vm949_vm1, %vm950_vm15 }
 0x245   :  { %v945_v62 = vmul.f32 %v2301_v22, %v944_v16  ;;  %v1496_v41 = vmul.f32 %v1432_v63, %v4180_v32 }
 0x247   :  { %v946_v53 = vmul.f32 0.5, %v945_v62  ;;  %v1564_v14 = vmul.f32 %v4474_v4, %v1496_v41 }
 0x249   :  { %v2303_v25 = vpop.eup %2302  ;;  %v947_v31 = vsub.f32 1.5, %v946_v53  ;;  %v1632_v9 = vadd.f32 %v4484_v47, %v1564_v14 }
 0x24a   :  { %v1104_v37 = vmul.f32 %v2303_v25, %v760_v23  ;;  %v1966_v15 = vpop.f32.mrf.mxu2  ;;  %vm1110_vm3 = vweird.f32 %v2303_v25 }
 0x24b   :  { %v948_v55 = vmul.f32 %v2301_v22, %v947_v31  ;;  %2167 = vmatmul.msk.f32.gmra.mxu3 %vm81_vm0, %v1632_v9  ;;  %2077 = vst.msk [vmem:[%s4775_s4 + $0x148] sm:$0xff] %vm2035_vm8, %v1966_v15  ;;  %vm1111_vm5 = vmor %vm1109_vm4, %vm1110_vm3 }
 0x24c   :  { %v1105_v18 = vmul.f32 %v2303_v25, %v1104_v37 }
 0x24d   :  { %v952_v27 = vsel %vm951_vm2, %v2301_v22, %v948_v55 }
 0x24e   :  { %v1106_v35 = vmul.f32 0.5, %v1105_v18  ;;  %v1448_v28 = vmul.f32 %v952_v27, %v4211_v30 }
 0x24f   :  { %v2014_v46 = vpop.f32.mrf.mxu3 }
 0x250   :  { %v1107_v32 = vsub.f32 1.5, %v1106_v35  ;;  %v1516_v52 = vmul.f32 %v4474_v4, %v1448_v28  ;;  %2093 = vst.msk [vmem:[%s4775_s4 + $0x1c8] sm:$0xff] %vm2035_vm8, %v2014_v46 }
 0x252   :  { %v1108_v58 = vmul.f32 %v2303_v25, %v1107_v32  ;;  %v1918_v48 = vpop.f32.mrf.mxu1  ;;  %v1584_v30 = vadd.f32 %v4484_v47, %v1516_v52 }
 0x253   :  { %2061 = vst.msk [vmem:[%s4775_s4 + $0xc8] sm:$0xff] %vm2035_vm8, %v1918_v48 }
 0x254   :  { %v1112_v42 = vsel %vm1111_vm5, %v2303_v25, %v1108_v58  ;;  %2119 = vmatmul.msk.f32.gmra.mxu0 %vm81_vm0, %v1584_v30 }
 0x255   :  { %v1870_v44 = vpop.f32.mrf.mxu0  ;;  %v1464_v3 = vmul.f32 %v1112_v42, %v4251_v51 }
 0x256   :  { %2045 = vst.msk [vmem:[%s4775_s4 + $0x48] sm:$0xff] %vm2035_vm8, %v1870_v44 }
 0x257   :  { %v1532_v12 = vmul.f32 %v4474_v4, %v1464_v3 }
 0x259   :  { %v1600_v21 = vadd.f32 %v4484_v47, %v1532_v12 }
 0x25b   :  { %2135 = vmatmul.msk.f32.gmra.mxu1 %vm81_vm0, %v1600_v21 }
 0x260   :  { %v1969_v29 = vpop.f32.mrf.mxu2 }
 0x261   :  { %2078 = vst.msk [vmem:[%s4775_s4 + $0x150] sm:$0xff] %vm2035_vm8, %v1969_v29 }
 0x265   :  { %v1873_v51 = vpop.f32.mrf.mxu0 }
 0x266   :  { %v2017_v39 = vpop.f32.mrf.mxu3  ;;  %2046 = vst.msk [vmem:[%s4775_s4 + $0x50] sm:$0xff] %vm2035_vm8, %v1873_v51 }
 0x267   :  { %2094 = vst.msk [vmem:[%s4775_s4 + $0x1d0] sm:$0xff] %vm2035_vm8, %v2017_v39 }
 0x26a   :  { %v1921_v4 = vpop.f32.mrf.mxu1 }
 0x26b   :  { %2062 = vst.msk [vmem:[%s4775_s4 + $0xd0] sm:$0xff] %vm2035_vm8, %v1921_v4 }
 0x274   :  { %v2020_v47 = vpop.f32.mrf.mxu3 }
 0x275   :  { %2095 = vst.msk [vmem:[%s4775_s4 + $0x1d8] sm:$0xff] %vm2035_vm8, %v2020_v47 }
 0x276   :  { %v1972_v54 = vpop.f32.mrf.mxu2  ;;  %v1876_v8 = vpop.f32.mrf.mxu0 }
 0x277   :  { %2079 = vst.msk [vmem:[%s4775_s4 + $0x158] sm:$0xff] %vm2035_vm8, %v1972_v54  ;;  %v1924_v17 = vpop.f32.mrf.mxu1 }
 0x278   :  { %2047 = vst.msk [vmem:[%s4775_s4 + $0x58] sm:$0xff] %vm2035_vm8, %v1876_v8 }
 0x279   :  { %2063 = vst.msk [vmem:[%s4775_s4 + $0xd8] sm:$0xff] %vm2035_vm8, %v1924_v17 }
 0x280   :  { %v1975_v43 = vpop.f32.mrf.mxu2 }
 0x281   :  { %2080 = vst.msk [vmem:[%s4775_s4 + $0x160] sm:$0xff] %vm2035_vm8, %v1975_v43 }
 0x287   :  { %v2023_v56 = vpop.f32.mrf.mxu3 }
 0x288   :  { %2096 = vst.msk [vmem:[%s4775_s4 + $0x1e0] sm:$0xff] %vm2035_vm8, %v2023_v56 }
 0x289   :  { %v1927_v6 = vpop.f32.mrf.mxu1 }
 0x28a   :  { %2064 = vst.msk [vmem:[%s4775_s4 + $0xe0] sm:$0xff] %vm2035_vm8, %v1927_v6 }
 0x28d   :  { %v1879_v13 = vpop.f32.mrf.mxu0 }
 0x28e   :  { %2048 = vst.msk [vmem:[%s4775_s4 + $0x60] sm:$0xff] %vm2035_vm8, %v1879_v13 }
 0x296   :  { %v1978_v5 = vpop.f32.mrf.mxu2 }
 0x297   :  { %v1882_v57 = vpop.f32.mrf.mxu0  ;;  %2081 = vst.msk [vmem:[%s4775_s4 + $0x168] sm:$0xff] %vm2035_vm8, %v1978_v5 }
 0x298   :  { %2049 = vst.msk [vmem:[%s4775_s4 + $0x68] sm:$0xff] %vm2035_vm8, %v1882_v57 }
 0x29b   :  { %v2026_v11 = vpop.f32.mrf.mxu3 }
 0x29c   :  { %2097 = vst.msk [vmem:[%s4775_s4 + $0x1e8] sm:$0xff] %vm2035_vm8, %v2026_v11 }
 0x2a0   :  { %v1930_v50 = vpop.f32.mrf.mxu1 }
 0x2a1   :  { %2065 = vst.msk [vmem:[%s4775_s4 + $0xe8] sm:$0xff] %vm2035_vm8, %v1930_v50 }
 0x2ad   :  { %v2029_v45 = vpop.f32.mrf.mxu3 }
 0x2ae   :  { %v1885_v59 = vpop.f32.mrf.mxu0  ;;  %v1981_v38 = vpop.f32.mrf.mxu2  ;;  %2098 = vst.msk [vmem:[%s4775_s4 + $0x1f0] sm:$0xff] %vm2035_vm8, %v2029_v45 }
 0x2af   :  { %2082 = vst.msk [vmem:[%s4775_s4 + $0x170] sm:$0xff] %vm2035_vm8, %v1981_v38 }
 0x2b0   :  { %v1933_v40 = vpop.f32.mrf.mxu1  ;;  %2050 = vst.msk [vmem:[%s4775_s4 + $0x70] sm:$0xff] %vm2035_vm8, %v1885_v59 }
 0x2b1   :  { %2066 = vst.msk [vmem:[%s4775_s4 + $0xf0] sm:$0xff] %vm2035_vm8, %v1933_v40 }
 0x2c6   :  { %v1984_v33 = vpop.f32.mrf.mxu2 }
 0x2c7   :  { %2083 = vst.msk [vmem:[%s4775_s4 + $0x178] sm:$0xff] %vm2035_vm8, %v1984_v33 }
 0x2ce   :  { %v2032_v61 = vpop.f32.mrf.mxu3 }
 0x2cf   :  { %2099 = vst.msk [vmem:[%s4775_s4 + $0x1f8] sm:$0xff] %vm2035_vm8, %v2032_v61 }
 0x2d1   :  { %v1888_v26 = vpop.f32.mrf.mxu0 }
 0x2d2   :  { %2051 = vst.msk [vmem:[%s4775_s4 + $0x78] sm:$0xff] %vm2035_vm8, %v1888_v26 }
 0x2d8   :  { %v1936_v49 = vpop.f32.mrf.mxu1 }
 0x2d9   :  { %2067 = vst.msk [vmem:[%s4775_s4 + $0xf8] sm:$0xff] %vm2035_vm8, %v1936_v49 }

</bundles_post_ra>
